<compile_context>
chip_gen: v7x
topology: tpu7x:2x2x1
jax: 0.10.0
libtpu: 0.0.40
codegen_flags: <defaults>
</compile_context>

<pallas_src>
import functools

import numpy as np
import jax
import jax.numpy as jnp
from jax.experimental import pallas as pl
from jax.experimental.pallas import tpu as pltpu

VMEM_SPEC = pl.BlockSpec(memory_space=pltpu.MemorySpace.VMEM)
_EPS = 1e-5


def conv2d_size_out(size, kernel_size=5, stride=2):
    return (size - (kernel_size - 1) - 1) // stride + 1


def _ru8(n):
    return ((n + 7) // 8) * 8


# ---------------------------------------------------------------------------
# In-kernel helpers
# ---------------------------------------------------------------------------
def _sigmoid(x):
    # Exact, numerically-stable sigmoid routed through the EUP tanh unit.
    return 0.5 * (jnp.tanh(0.5 * x) + 1.0)


def _bn_relu(y, gamma, beta, eps):
    # BatchNorm2d training-mode statistics over all (N*H*W) rows per channel,
    # biased variance; two-pass (mean, centered sum-of-squares) form.
    inv_m = 1.0 / y.shape[0]
    mean = jnp.sum(y, axis=0, keepdims=True) * inv_m
    d = y - mean
    var = jnp.sum(d * d, axis=0, keepdims=True) * inv_m
    return jnp.maximum(d * jax.lax.rsqrt(var + eps) * gamma + beta, 0.0)


# ---------------------------------------------------------------------------
# The single fused kernel
# ---------------------------------------------------------------------------
def _single_q_kernel(patches_ref, action_ref, w1_ref, w2_ref, wbody_ref,
                     wmisc_ref, out_ref, *, oh1, ow1, oh2, ow2, ksz, eps):
    f32 = jnp.float32
    batch, acts = action_ref.shape
    c1 = w1_ref.shape[1]
    c2 = w2_ref.shape[1]
    feats = wbody_ref.shape[1] // 3

    # ---- unpack the misc slab (all biases / BN params / small head mats) ----
    wm = wmisc_ref[...]
    off_wqa = _ru8(feats)
    off_wva = off_wqa + _ru8(acts)
    off_vec = off_wva + _ru8(acts)
    qw = wm[0:feats, 0:acts]                       # q head weight   [F, A]
    wqa = wm[off_wqa:off_wqa + acts, 0:feats]      # hidden_q action part [A, F]
    wva = wm[off_wva:off_wva + acts, 0:feats]      # hidden_v action part [A, F]
    bn1_g = wm[off_vec + 0:off_vec + 1, 0:c1]
    bn1_b = wm[off_vec + 1:off_vec + 2, 0:c1]
    bn2_g = wm[off_vec + 2:off_vec + 3, 0:c2]
    bn2_b = wm[off_vec + 3:off_vec + 4, 0:c2]
    bh = wm[off_vec + 4:off_vec + 5, 0:feats]
    bq = wm[off_vec + 5:off_vec + 6, 0:feats]
    bv = wm[off_vec + 6:off_vec + 7, 0:feats]
    qb = wm[off_vec + 7:off_vec + 8, 0:acts]

    # ---- conv1 (one im2col matmul) + BN1(train) + ReLU ----------------------
    # patches rows are ordered (j1, ph=i1%2, i1h=i1//2, b); cols (cin, kh, kw).
    y1 = jnp.dot(patches_ref[...], w1_ref[...], preferred_element_type=f32)
    a1 = _bn_relu(y1, bn1_g, bn1_b, eps)                       # [OW1*OH1*B, C1]

    # ---- lane-densify conv1 activations: rows (ph, i1h, b), lanes (j1, c1) --
    rpj = oh1 * batch
    a1w = jnp.concatenate([a1[j * rpj:(j + 1) * rpj, :] for j in range(ow1)],
                          axis=1)                              # [OH1*B, OW1*C1]

    # ---- conv2 im2col from contiguous static slices (phase-split trick) -----
    # patches2 rows (j2, i2, b); cols (kh, kw, cin).  5*3 = 15 block copies.
    halfh = oh1 // 2
    blk = oh2 * batch
    row_groups = []
    for j2 in range(ow2):
        lane0 = 2 * j2 * c1
        pieces = []
        for kh in range(ksz):
            r0 = (kh % 2) * halfh * batch + (kh // 2) * batch
            pieces.append(a1w[r0:r0 + blk, lane0:lane0 + ksz * c1])
        row_groups.append(jnp.concatenate(pieces, axis=1))     # [blk, k*k*C1]
    patches2 = jnp.concatenate(row_groups, axis=0)             # [OW2*OH2*B, 400]

    # ---- conv2 as ONE matmul + BN2(train) + ReLU ----------------------------
    y2 = jnp.dot(patches2, w2_ref[...], preferred_element_type=f32)
    a2 = _bn_relu(y2, bn2_g, bn2_b, eps)                       # rows (j2,i2,b)

    # ---- NCHW flatten as lane concat; hidden / v-body / q-body in ONE matmul
    npos = oh2 * ow2
    a2w = jnp.concatenate([a2[p * batch:(p + 1) * batch, :] for p in range(npos)],
                          axis=1)                              # [B, P2*C2]
    body = jnp.dot(a2w, wbody_ref[...], preferred_element_type=f32)  # [B, 3F]

    hidden = _sigmoid(body[:, 0:feats] + bh)                   # [B, F]
    q_values = _sigmoid(jnp.dot(hidden, qw, preferred_element_type=f32) + qb)

    # ---- one-hot(argmax) with first-max tie-break (matches torch.argmax) ----
    qmax = jnp.max(q_values, axis=1, keepdims=True)            # [B, 1]
    col = jax.lax.broadcasted_iota(jnp.int32, q_values.shape, 1)
    first_max = jnp.min(jnp.where(q_values == qmax, col, acts),
                        axis=1, keepdims=True)
    one_hot_opt = (col == first_max).astype(f32)

    action = action_ref[...]

    # ---- hidden_v / hidden_q = SiLU(Linear(concat([head, flat]))) -----------
    g_pre = body[:, feats:2 * feats] + bq + jnp.dot(
        action * q_values, wqa, preferred_element_type=f32)
    v_pre = body[:, 2 * feats:3 * feats] + bv + jnp.dot(
        one_hot_opt * q_values, wva, preferred_element_type=f32)
    hidden_q = g_pre * _sigmoid(g_pre)
    hidden_v = v_pre * _sigmoid(v_pre)
    q = jnp.sum(action * q_values, axis=1, keepdims=True)      # [B, 1]

    # ---- single lane-dense [B, 128] store -----------------------------------
    used = acts + 2 * feats + 2
    parts = [q_values, hidden_q, hidden_v, q, qmax]
    if out_ref.shape[1] > used:
        parts.append(jnp.zeros((batch, out_ref.shape[1] - used), f32))
    out_ref[...] = jnp.concatenate(parts, axis=1)


# ---------------------------------------------------------------------------
# jit'ed forward wrapper (single pallas_call + fused XLA glue)
# ---------------------------------------------------------------------------
@functools.partial(jax.jit, static_argnames=("acts", "feats"))
def _fused_forward(arrays, obs, action, *, acts, feats):
    batch, cin, h, w = obs.shape
    ksz = 5
    oh1, ow1 = conv2d_size_out(h), conv2d_size_out(w)
    oh2, ow2 = conv2d_size_out(oh1), conv2d_size_out(ow1)
    assert oh1 % 2 == 0, "in-kernel conv2 im2col assumes an even conv1 output height"
    assert acts + 2 * feats + 2 <= 128

    # conv1 im2col via pure strided slicing (no separate convolution HLO):
    # rows (j1, ph=i1%2, i1h=i1//2, b); cols (cin, kh, kw) to match
    # conv1_w.reshape(Cout, -1).
    taps = []
    for kh in range(ksz):
        for kw in range(ksz):
            taps.append(obs[:, :, kh:kh + 2 * oh1 - 1:2, kw:kw + 2 * ow1 - 1:2])
    t = jnp.stack(taps, axis=0).reshape(ksz, ksz, batch, cin, oh1 // 2, 2, ow1)
    t = t.transpose(6, 5, 4, 2, 3, 0, 1)            # (j1, ph, i1h, b, cin, kh, kw)
    patches = t.reshape(ow1 * oh1 * batch, cin * ksz * ksz)

    slab = pl.pallas_call(
        functools.partial(_single_q_kernel, oh1=oh1, ow1=ow1, oh2=oh2, ow2=ow2,
                          ksz=ksz, eps=_EPS),
        out_shape=jax.ShapeDtypeStruct((batch, 128), jnp.float32),
        in_specs=[VMEM_SPEC] * 6,
        out_specs=VMEM_SPEC,
    )(patches, action, arrays["w1"], arrays["w2"], arrays["wbody"], arrays["wmisc"])

    q_values = slab[:, :acts]
    hidden_q = slab[:, acts:acts + feats]
    hidden_v = slab[:, acts + feats:acts + 2 * feats]
    q = slab[:, acts + 2 * feats:acts + 2 * feats + 1]
    qmax = slab[:, acts + 2 * feats + 1:acts + 2 * feats + 2]
    return q_values, hidden_q, hidden_v, q, qmax


def single_q_forward(packed, obs, action=None):
    """Matches SingleQ.forward: returns (q_values, hidden_q, hidden_v, q, qmax)."""
    # TODO(synk): torchvision ToTensor() host-side preprocessing (to_tensor) is
    # not translated; obs must already be a float NCHW tensor.  BN running
    # stats are not updated (forward output uses batch stats, like train mode).
    acts, feats = packed["acts"], packed["feats"]
    arrays = {k: v for k, v in packed.items() if k not in ("acts", "feats")}
    if action is None:
        dummy = jnp.zeros((obs.shape[0], acts), jnp.float32)
        q_values, *_ = _fused_forward(arrays, obs, dummy, acts=acts, feats=feats)
        return q_values, None, None, None, None
    return _fused_forward(arrays, obs, action, acts=acts, feats=feats)


# ---------------------------------------------------------------------------
# Parameter construction (PyTorch layouts) and one-time kernel-layout packing
# ---------------------------------------------------------------------------
def init_params(key, actions_n=3, w=24, h=24, features_n=32):
    conv_w = conv2d_size_out(conv2d_size_out(w))
    conv_h = conv2d_size_out(conv2d_size_out(h))
    lin_in = conv_h * conv_w * 32
    ks = jax.random.split(key, 8)
    n = lambda k, shape, s=0.05: (s * jax.random.normal(k, shape)).astype(jnp.float32)
    return {
        "conv1_w": n(ks[0], (16, 3, 5, 5)),
        "bn1_g": jnp.ones((16,), jnp.float32),
        "bn1_b": jnp.zeros((16,), jnp.float32),
        "conv2_w": n(ks[1], (32, 16, 5, 5)),
        "bn2_g": jnp.ones((32,), jnp.float32),
        "bn2_b": jnp.zeros((32,), jnp.float32),
        "hidden_w": n(ks[2], (features_n, lin_in)),
        "hidden_b": n(ks[3], (features_n,)),
        "q_w": n(ks[4], (actions_n, features_n)),
        "q_b": n(ks[5], (actions_n,)),
        "hidden_v_w": n(ks[6], (features_n, lin_in + actions_n)),
        "hidden_v_b": jnp.zeros((features_n,), jnp.float32),
        "hidden_q_w": n(ks[7], (features_n, lin_in + actions_n)),
        "hidden_q_b": jnp.zeros((features_n,), jnp.float32),
    }


def pack_params(p, *, h=24, w=24):
    """One-time conversion of PyTorch-layout parameters into the kernel's
    matmul layouts (no per-batch gather matrices needed anymore)."""
    ksz = 5
    c1 = p["conv1_w"].shape[0]
    c2 = p["conv2_w"].shape[0]
    feats = p["hidden_w"].shape[0]
    acts = p["q_w"].shape[0]
    oh1, ow1 = conv2d_size_out(h), conv2d_size_out(w)
    oh2, ow2 = conv2d_size_out(oh1), conv2d_size_out(ow1)
    npos = oh2 * ow2

    conv1_w = np.asarray(p["conv1_w"], np.float32)
    conv2_w = np.asarray(p["conv2_w"], np.float32)
    hidden_w = np.asarray(p["hidden_w"], np.float32)
    hq_w = np.asarray(p["hidden_q_w"], np.float32)
    hv_w = np.asarray(p["hidden_v_w"], np.float32)

    # conv1: [C1, Cin, kh, kw] -> [Cin*k*k, C1]
    w1 = conv1_w.reshape(c1, -1).T
    # conv2: [C2, C1, kh, kw] -> cols (kh, kw, cin) -> [k*k*C1, C2]
    w2 = conv2_w.transpose(2, 3, 1, 0).reshape(ksz * ksz * c1, c2)

    # Kernel lane order (p=(j2*oh2+i2), c) -> torch NCHW flat index c*P2+i2*ow2+j2.
    idx = np.empty(npos * c2, np.int32)
    for j2 in range(ow2):
        for i2 in range(oh2):
            for c in range(c2):
                idx[(j2 * oh2 + i2) * c2 + c] = c * npos + i2 * ow2 + j2
    wb_h = hidden_w[:, idx].T                       # [P2*C2, F]
    wb_q = hq_w[:, acts:][:, idx].T
    wb_v = hv_w[:, acts:][:, idx].T
    wbody = np.concatenate([wb_h, wb_q, wb_v], axis=1)          # [P2*C2, 3F]

    # misc slab: q-head weight, hidden_q/hidden_v action-parts, all biases/BN.
    width = max(feats, c2, c1, acts)
    off_wqa = _ru8(feats)
    off_wva = off_wqa + _ru8(acts)
    off_vec = off_wva + _ru8(acts)
    wm = np.zeros((off_vec + 8, width), np.float32)
    wm[0:feats, 0:acts] = np.asarray(p["q_w"], np.float32).T
    wm[off_wqa:off_wqa + acts, 0:feats] = hq_w[:, :acts].T
    wm[off_wva:off_wva + acts, 0:feats] = hv_w[:, :acts].T
    wm[off_vec + 0, 0:c1] = np.asarray(p["bn1_g"], np.float32)
    wm[off_vec + 1, 0:c1] = np.asarray(p["bn1_b"], np.float32)
    wm[off_vec + 2, 0:c2] = np.asarray(p["bn2_g"], np.float32)
    wm[off_vec + 3, 0:c2] = np.asarray(p["bn2_b"], np.float32)
    wm[off_vec + 4, 0:feats] = np.asarray(p["hidden_b"], np.float32)
    wm[off_vec + 5, 0:feats] = np.asarray(p["hidden_q_b"], np.float32)
    wm[off_vec + 6, 0:feats] = np.asarray(p["hidden_v_b"], np.float32)
    wm[off_vec + 7, 0:acts] = np.asarray(p["q_b"], np.float32)

    return {
        "w1": jnp.asarray(w1),          # [75, 16]
        "w2": jnp.asarray(w2),          # [400, 32]
        "wbody": jnp.asarray(wbody),    # [288, 96]
        "wmisc": jnp.asarray(wm),       # [56, 32]
        "acts": acts,
        "feats": feats,
    }


# ---------------------------------------------------------------------------
# Pure-JAX reference (mirrors the PyTorch forward) for a correctness check
# ---------------------------------------------------------------------------
def _reference_forward(raw, obs, action, eps=_EPS):
    hp = jax.lax.Precision.HIGHEST

    def bn2d(x, g, b):
        mean = jnp.mean(x, axis=(0, 2, 3), keepdims=True)
        var = jnp.mean((x - mean) ** 2, axis=(0, 2, 3), keepdims=True)
        return ((x - mean) * jax.lax.rsqrt(var + eps) * g.reshape(1, -1, 1, 1)
                + b.reshape(1, -1, 1, 1))

    def conv(x, wgt):
        dn = jax.lax.conv_dimension_numbers(x.shape, wgt.shape,
                                            ("NCHW", "OIHW", "NCHW"))
        return jax.lax.conv_general_dilated(x, wgt, (2, 2), "VALID",
                                            dimension_numbers=dn, precision=hp)

    x = jnp.maximum(bn2d(conv(obs, raw["conv1_w"]), raw["bn1_g"], raw["bn1_b"]), 0.0)
    x = jnp.maximum(bn2d(conv(x, raw["conv2_w"]), raw["bn2_g"], raw["bn2_b"]), 0.0)
    flat = x.reshape(x.shape[0], -1)
    hidden = jax.nn.sigmoid(jnp.dot(flat, raw["hidden_w"].T, precision=hp)
                            + raw["hidden_b"])
    q_values = jax.nn.sigmoid(jnp.dot(hidden, raw["q_w"].T, precision=hp)
                              + raw["q_b"])
    one_hot = jax.nn.one_hot(jnp.argmax(q_values, axis=1), q_values.shape[1],
                             dtype=q_values.dtype)
    hv = jax.nn.silu(jnp.dot(jnp.concatenate([one_hot * q_values, flat], 1),
                             raw["hidden_v_w"].T, precision=hp) + raw["hidden_v_b"])
    hq = jax.nn.silu(jnp.dot(jnp.concatenate([action * q_values, flat], 1),
                             raw["hidden_q_w"].T, precision=hp) + raw["hidden_q_b"])
    q = jnp.sum(action * q_values, axis=1, keepdims=True)
    qmax = jnp.max(q_values, axis=1, keepdims=True)
    return q_values, hq, hv, q, qmax


if __name__ == "__main__":
    key = jax.random.PRNGKey(0)
    k_param, k_obs = jax.random.split(key)

    actions_n, w, h, features_n, batch = 3, 24, 24, 32, 2
    raw = init_params(k_param, actions_n=actions_n, w=w, h=h, features_n=features_n)
    packed = pack_params(raw, h=h, w=w)

    obs = jax.random.normal(k_obs, (batch, 3, h, w), jnp.float32)          # NCHW
    action = jax.nn.one_hot(jnp.array([0, 2]), actions_n, dtype=jnp.float32)

    outs = single_q_forward(packed, obs, action)
    jax.block_until_ready(outs)
    q_values, hidden_q_f, hidden_v_f, q, qmax = outs

    assert q_values.shape == (batch, actions_n)
    assert hidden_q_f.shape == (batch, features_n)
    assert hidden_v_f.shape == (batch, features_n)
    assert q.shape == (batch, 1) and qmax.shape == (batch, 1)

    ref = _reference_forward(raw, obs, action)
    for got, want in zip(outs, ref):
        np.testing.assert_allclose(np.asarray(got), np.asarray(want),
                                   rtol=2e-3, atol=2e-3)

    print("KERNEL_OK")
</pallas_src>

<mosaic_0001>
module attributes {stable_mosaic.version = 11 : i64} {
  func.func @_single_q_kernel(%arg0: memref<200x75xf32, #tpu.memory_space<vmem>>, %arg1: memref<2x3xf32, #tpu.memory_space<vmem>>, %arg2: memref<75x16xf32, #tpu.memory_space<vmem>>, %arg3: memref<400x32xf32, #tpu.memory_space<vmem>>, %arg4: memref<288x96xf32, #tpu.memory_space<vmem>>, %arg5: memref<56x32xf32, #tpu.memory_space<vmem>>, %arg6: memref<2x128xf32, #tpu.memory_space<vmem>>) attributes {dimension_semantics = [], scalar_prefetch = 0 : i64, scratch_operands = 0 : i64, tpu.core_type = #tpu.core_type<tc>} {
    %c0 = arith.constant 0 : index
    %c0_0 = arith.constant 0 : index
    %0 = vector.load %arg5[%c0, %c0_0] : memref<56x32xf32, #tpu.memory_space<vmem>>, vector<56x32xf32>
    %1 = vector.extract_strided_slice %0 {offsets = [0, 0], sizes = [32, 3], strides = [1, 1]} : vector<56x32xf32> to vector<32x3xf32>
    %2 = vector.extract_strided_slice %0 {offsets = [32, 0], sizes = [3, 32], strides = [1, 1]} : vector<56x32xf32> to vector<3x32xf32>
    %3 = vector.extract_strided_slice %0 {offsets = [40, 0], sizes = [3, 32], strides = [1, 1]} : vector<56x32xf32> to vector<3x32xf32>
    %4 = vector.extract_strided_slice %0 {offsets = [48, 0], sizes = [1, 16], strides = [1, 1]} : vector<56x32xf32> to vector<1x16xf32>
    %5 = vector.extract_strided_slice %0 {offsets = [49, 0], sizes = [1, 16], strides = [1, 1]} : vector<56x32xf32> to vector<1x16xf32>
    %6 = vector.extract_strided_slice %0 {offsets = [50, 0], sizes = [1, 32], strides = [1, 1]} : vector<56x32xf32> to vector<1x32xf32>
    %7 = vector.extract_strided_slice %0 {offsets = [51, 0], sizes = [1, 32], strides = [1, 1]} : vector<56x32xf32> to vector<1x32xf32>
    %8 = vector.extract_strided_slice %0 {offsets = [52, 0], sizes = [1, 32], strides = [1, 1]} : vector<56x32xf32> to vector<1x32xf32>
    %9 = vector.extract_strided_slice %0 {offsets = [53, 0], sizes = [1, 32], strides = [1, 1]} : vector<56x32xf32> to vector<1x32xf32>
    %10 = vector.extract_strided_slice %0 {offsets = [54, 0], sizes = [1, 32], strides = [1, 1]} : vector<56x32xf32> to vector<1x32xf32>
    %11 = vector.extract_strided_slice %0 {offsets = [55, 0], sizes = [1, 3], strides = [1, 1]} : vector<56x32xf32> to vector<1x3xf32>
    %c0_1 = arith.constant 0 : index
    %c0_2 = arith.constant 0 : index
    %12 = vector.load %arg0[%c0_1, %c0_2] : memref<200x75xf32, #tpu.memory_space<vmem>>, vector<200x75xf32>
    %c0_3 = arith.constant 0 : index
    %c0_4 = arith.constant 0 : index
    %13 = vector.load %arg2[%c0_3, %c0_4] : memref<75x16xf32, #tpu.memory_space<vmem>>, vector<75x16xf32>
    %cst = arith.constant dense<0.000000e+00> : vector<200x16xf32>
    %14 = tpu.matmul %12, %13, %cst {dimension_numbers = #tpu.dot_dimension_numbers<[1], [0], [0], [1], [0, 0, 1, 1], [], []>} : vector<200x75xf32>, vector<75x16xf32>, vector<200x16xf32> -> vector<200x16xf32>
    %cst_5 = arith.constant dense<0.000000e+00> : vector<16xf32>
    %15 = vector.multi_reduction <add>, %14, %cst_5 [0] : vector<200x16xf32> to vector<16xf32>
    %16 = vector.shape_cast %15 : vector<16xf32> to vector<1x16xf32>
    %cst_6 = arith.constant 5.000000e-03 : f32
    %17 = vector.broadcast %cst_6 : f32 to vector<1x16xf32>
    %18 = arith.mulf %16, %17 : vector<1x16xf32>
    %19 = vector.broadcast %18 : vector<1x16xf32> to vector<200x16xf32>
    %20 = arith.subf %14, %19 : vector<200x16xf32>
    %21 = arith.mulf %20, %20 : vector<200x16xf32>
    %cst_7 = arith.constant dense<0.000000e+00> : vector<16xf32>
    %22 = vector.multi_reduction <add>, %21, %cst_7 [0] : vector<200x16xf32> to vector<16xf32>
    %23 = vector.shape_cast %22 : vector<16xf32> to vector<1x16xf32>
    %cst_8 = arith.constant 5.000000e-03 : f32
    %24 = vector.broadcast %cst_8 : f32 to vector<1x16xf32>
    %25 = arith.mulf %23, %24 : vector<1x16xf32>
    %cst_9 = arith.constant 9.99999974E-6 : f32
    %26 = vector.broadcast %cst_9 : f32 to vector<1x16xf32>
    %27 = arith.addf %25, %26 : vector<1x16xf32>
    %28 = math.rsqrt %27 : vector<1x16xf32>
    %29 = vector.broadcast %28 : vector<1x16xf32> to vector<200x16xf32>
    %30 = arith.mulf %20, %29 : vector<200x16xf32>
    %31 = vector.broadcast %4 : vector<1x16xf32> to vector<200x16xf32>
    %32 = arith.mulf %30, %31 : vector<200x16xf32>
    %33 = vector.broadcast %5 : vector<1x16xf32> to vector<200x16xf32>
    %34 = arith.addf %32, %33 : vector<200x16xf32>
    %cst_10 = arith.constant 0.000000e+00 : f32
    %35 = vector.broadcast %cst_10 : f32 to vector<200x16xf32>
    %36 = arith.maximumf %34, %35 : vector<200x16xf32>
    %37 = vector.extract_strided_slice %36 {offsets = [0, 0], sizes = [20, 16], strides = [1, 1]} : vector<200x16xf32> to vector<20x16xf32>
    %38 = vector.extract_strided_slice %36 {offsets = [20, 0], sizes = [20, 16], strides = [1, 1]} : vector<200x16xf32> to vector<20x16xf32>
    %39 = vector.extract_strided_slice %36 {offsets = [40, 0], sizes = [20, 16], strides = [1, 1]} : vector<200x16xf32> to vector<20x16xf32>
    %40 = vector.extract_strided_slice %36 {offsets = [60, 0], sizes = [20, 16], strides = [1, 1]} : vector<200x16xf32> to vector<20x16xf32>
    %41 = vector.extract_strided_slice %36 {offsets = [80, 0], sizes = [20, 16], strides = [1, 1]} : vector<200x16xf32> to vector<20x16xf32>
    %42 = vector.extract_strided_slice %36 {offsets = [100, 0], sizes = [20, 16], strides = [1, 1]} : vector<200x16xf32> to vector<20x16xf32>
    %43 = vector.extract_strided_slice %36 {offsets = [120, 0], sizes = [20, 16], strides = [1, 1]} : vector<200x16xf32> to vector<20x16xf32>
    %44 = vector.extract_strided_slice %36 {offsets = [140, 0], sizes = [20, 16], strides = [1, 1]} : vector<200x16xf32> to vector<20x16xf32>
    %45 = vector.extract_strided_slice %36 {offsets = [160, 0], sizes = [20, 16], strides = [1, 1]} : vector<200x16xf32> to vector<20x16xf32>
    %46 = vector.extract_strided_slice %36 {offsets = [180, 0], sizes = [20, 16], strides = [1, 1]} : vector<200x16xf32> to vector<20x16xf32>
    %47 = tpu.concatenate %37, %38, %39, %40, %41, %42, %43, %44, %45, %46 in 1 : vector<20x16xf32>, vector<20x16xf32>, vector<20x16xf32>, vector<20x16xf32>, vector<20x16xf32>, vector<20x16xf32>, vector<20x16xf32>, vector<20x16xf32>, vector<20x16xf32>, vector<20x16xf32> -> vector<20x160xf32>
    %48 = vector.extract_strided_slice %47 {offsets = [0, 0], sizes = [6, 80], strides = [1, 1]} : vector<20x160xf32> to vector<6x80xf32>
    %49 = vector.extract_strided_slice %47 {offsets = [10, 0], sizes = [6, 80], strides = [1, 1]} : vector<20x160xf32> to vector<6x80xf32>
    %50 = vector.extract_strided_slice %47 {offsets = [2, 0], sizes = [6, 80], strides = [1, 1]} : vector<20x160xf32> to vector<6x80xf32>
    %51 = vector.extract_strided_slice %47 {offsets = [12, 0], sizes = [6, 80], strides = [1, 1]} : vector<20x160xf32> to vector<6x80xf32>
    %52 = vector.extract_strided_slice %47 {offsets = [4, 0], sizes = [6, 80], strides = [1, 1]} : vector<20x160xf32> to vector<6x80xf32>
    %53 = tpu.concatenate %48, %49, %50, %51, %52 in 1 : vector<6x80xf32>, vector<6x80xf32>, vector<6x80xf32>, vector<6x80xf32>, vector<6x80xf32> -> vector<6x400xf32>
    %54 = vector.extract_strided_slice %47 {offsets = [0, 32], sizes = [6, 80], strides = [1, 1]} : vector<20x160xf32> to vector<6x80xf32>
    %55 = vector.extract_strided_slice %47 {offsets = [10, 32], sizes = [6, 80], strides = [1, 1]} : vector<20x160xf32> to vector<6x80xf32>
    %56 = vector.extract_strided_slice %47 {offsets = [2, 32], sizes = [6, 80], strides = [1, 1]} : vector<20x160xf32> to vector<6x80xf32>
    %57 = vector.extract_strided_slice %47 {offsets = [12, 32], sizes = [6, 80], strides = [1, 1]} : vector<20x160xf32> to vector<6x80xf32>
    %58 = vector.extract_strided_slice %47 {offsets = [4, 32], sizes = [6, 80], strides = [1, 1]} : vector<20x160xf32> to vector<6x80xf32>
    %59 = tpu.concatenate %54, %55, %56, %57, %58 in 1 : vector<6x80xf32>, vector<6x80xf32>, vector<6x80xf32>, vector<6x80xf32>, vector<6x80xf32> -> vector<6x400xf32>
    %60 = vector.extract_strided_slice %47 {offsets = [0, 64], sizes = [6, 80], strides = [1, 1]} : vector<20x160xf32> to vector<6x80xf32>
    %61 = vector.extract_strided_slice %47 {offsets = [10, 64], sizes = [6, 80], strides = [1, 1]} : vector<20x160xf32> to vector<6x80xf32>
    %62 = vector.extract_strided_slice %47 {offsets = [2, 64], sizes = [6, 80], strides = [1, 1]} : vector<20x160xf32> to vector<6x80xf32>
    %63 = vector.extract_strided_slice %47 {offsets = [12, 64], sizes = [6, 80], strides = [1, 1]} : vector<20x160xf32> to vector<6x80xf32>
    %64 = vector.extract_strided_slice %47 {offsets = [4, 64], sizes = [6, 80], strides = [1, 1]} : vector<20x160xf32> to vector<6x80xf32>
    %65 = tpu.concatenate %60, %61, %62, %63, %64 in 1 : vector<6x80xf32>, vector<6x80xf32>, vector<6x80xf32>, vector<6x80xf32>, vector<6x80xf32> -> vector<6x400xf32>
    %66 = tpu.concatenate %53, %59, %65 in 0 : vector<6x400xf32>, vector<6x400xf32>, vector<6x400xf32> -> vector<18x400xf32>
    %c0_11 = arith.constant 0 : index
    %c0_12 = arith.constant 0 : index
    %67 = vector.load %arg3[%c0_11, %c0_12] : memref<400x32xf32, #tpu.memory_space<vmem>>, vector<400x32xf32>
    %cst_13 = arith.constant dense<0.000000e+00> : vector<18x32xf32>
    %68 = tpu.matmul %66, %67, %cst_13 {dimension_numbers = #tpu.dot_dimension_numbers<[1], [0], [0], [1], [0, 0, 1, 1], [], []>} : vector<18x400xf32>, vector<400x32xf32>, vector<18x32xf32> -> vector<18x32xf32>
    %cst_14 = arith.constant dense<0.000000e+00> : vector<32xf32>
    %69 = vector.multi_reduction <add>, %68, %cst_14 [0] : vector<18x32xf32> to vector<32xf32>
    %70 = vector.shape_cast %69 : vector<32xf32> to vector<1x32xf32>
    %cst_15 = arith.constant 0.055555556 : f32
    %71 = vector.broadcast %cst_15 : f32 to vector<1x32xf32>
    %72 = arith.mulf %70, %71 : vector<1x32xf32>
    %73 = vector.broadcast %72 : vector<1x32xf32> to vector<18x32xf32>
    %74 = arith.subf %68, %73 : vector<18x32xf32>
    %75 = arith.mulf %74, %74 : vector<18x32xf32>
    %cst_16 = arith.constant dense<0.000000e+00> : vector<32xf32>
    %76 = vector.multi_reduction <add>, %75, %cst_16 [0] : vector<18x32xf32> to vector<32xf32>
    %77 = vector.shape_cast %76 : vector<32xf32> to vector<1x32xf32>
    %cst_17 = arith.constant 0.055555556 : f32
    %78 = vector.broadcast %cst_17 : f32 to vector<1x32xf32>
    %79 = arith.mulf %77, %78 : vector<1x32xf32>
    %cst_18 = arith.constant 9.99999974E-6 : f32
    %80 = vector.broadcast %cst_18 : f32 to vector<1x32xf32>
    %81 = arith.addf %79, %80 : vector<1x32xf32>
    %82 = math.rsqrt %81 : vector<1x32xf32>
    %83 = vector.broadcast %82 : vector<1x32xf32> to vector<18x32xf32>
    %84 = arith.mulf %74, %83 : vector<18x32xf32>
    %85 = vector.broadcast %6 : vector<1x32xf32> to vector<18x32xf32>
    %86 = arith.mulf %84, %85 : vector<18x32xf32>
    %87 = vector.broadcast %7 : vector<1x32xf32> to vector<18x32xf32>
    %88 = arith.addf %86, %87 : vector<18x32xf32>
    %cst_19 = arith.constant 0.000000e+00 : f32
    %89 = vector.broadcast %cst_19 : f32 to vector<18x32xf32>
    %90 = arith.maximumf %88, %89 : vector<18x32xf32>
    %91 = vector.extract_strided_slice %90 {offsets = [0, 0], sizes = [2, 32], strides = [1, 1]} : vector<18x32xf32> to vector<2x32xf32>
    %92 = vector.extract_strided_slice %90 {offsets = [2, 0], sizes = [2, 32], strides = [1, 1]} : vector<18x32xf32> to vector<2x32xf32>
    %93 = vector.extract_strided_slice %90 {offsets = [4, 0], sizes = [2, 32], strides = [1, 1]} : vector<18x32xf32> to vector<2x32xf32>
    %94 = vector.extract_strided_slice %90 {offsets = [6, 0], sizes = [2, 32], strides = [1, 1]} : vector<18x32xf32> to vector<2x32xf32>
    %95 = vector.extract_strided_slice %90 {offsets = [8, 0], sizes = [2, 32], strides = [1, 1]} : vector<18x32xf32> to vector<2x32xf32>
    %96 = vector.extract_strided_slice %90 {offsets = [10, 0], sizes = [2, 32], strides = [1, 1]} : vector<18x32xf32> to vector<2x32xf32>
    %97 = vector.extract_strided_slice %90 {offsets = [12, 0], sizes = [2, 32], strides = [1, 1]} : vector<18x32xf32> to vector<2x32xf32>
    %98 = vector.extract_strided_slice %90 {offsets = [14, 0], sizes = [2, 32], strides = [1, 1]} : vector<18x32xf32> to vector<2x32xf32>
    %99 = vector.extract_strided_slice %90 {offsets = [16, 0], sizes = [2, 32], strides = [1, 1]} : vector<18x32xf32> to vector<2x32xf32>
    %100 = tpu.concatenate %91, %92, %93, %94, %95, %96, %97, %98, %99 in 1 : vector<2x32xf32>, vector<2x32xf32>, vector<2x32xf32>, vector<2x32xf32>, vector<2x32xf32>, vector<2x32xf32>, vector<2x32xf32>, vector<2x32xf32>, vector<2x32xf32> -> vector<2x288xf32>
    %c0_20 = arith.constant 0 : index
    %c0_21 = arith.constant 0 : index
    %101 = vector.load %arg4[%c0_20, %c0_21] : memref<288x96xf32, #tpu.memory_space<vmem>>, vector<288x96xf32>
    %cst_22 = arith.constant dense<0.000000e+00> : vector<2x96xf32>
    %102 = tpu.matmul %100, %101, %cst_22 {dimension_numbers = #tpu.dot_dimension_numbers<[1], [0], [0], [1], [0, 0, 1, 1], [], []>} : vector<2x288xf32>, vector<288x96xf32>, vector<2x96xf32> -> vector<2x96xf32>
    %103 = vector.extract_strided_slice %102 {offsets = [0, 0], sizes = [2, 32], strides = [1, 1]} : vector<2x96xf32> to vector<2x32xf32>
    %104 = vector.broadcast %8 : vector<1x32xf32> to vector<2x32xf32>
    %105 = arith.addf %103, %104 : vector<2x32xf32>
    %cst_23 = arith.constant 5.000000e-01 : f32
    %106 = vector.broadcast %cst_23 : f32 to vector<2x32xf32>
    %107 = arith.mulf %106, %105 : vector<2x32xf32>
    %108 = math.tanh %107 : vector<2x32xf32>
    %cst_24 = arith.constant 1.000000e+00 : f32
    %109 = vector.broadcast %cst_24 : f32 to vector<2x32xf32>
    %110 = arith.addf %108, %109 : vector<2x32xf32>
    %cst_25 = arith.constant 5.000000e-01 : f32
    %111 = vector.broadcast %cst_25 : f32 to vector<2x32xf32>
    %112 = arith.mulf %111, %110 : vector<2x32xf32>
    %cst_26 = arith.constant dense<0.000000e+00> : vector<2x3xf32>
    %113 = tpu.matmul %112, %1, %cst_26 {dimension_numbers = #tpu.dot_dimension_numbers<[1], [0], [0], [1], [0, 0, 1, 1], [], []>} : vector<2x32xf32>, vector<32x3xf32>, vector<2x3xf32> -> vector<2x3xf32>
    %114 = vector.broadcast %11 : vector<1x3xf32> to vector<2x3xf32>
    %115 = arith.addf %113, %114 : vector<2x3xf32>
    %cst_27 = arith.constant 5.000000e-01 : f32
    %116 = vector.broadcast %cst_27 : f32 to vector<2x3xf32>
    %117 = arith.mulf %116, %115 : vector<2x3xf32>
    %118 = math.tanh %117 : vector<2x3xf32>
    %cst_28 = arith.constant 1.000000e+00 : f32
    %119 = vector.broadcast %cst_28 : f32 to vector<2x3xf32>
    %120 = arith.addf %118, %119 : vector<2x3xf32>
    %cst_29 = arith.constant 5.000000e-01 : f32
    %121 = vector.broadcast %cst_29 : f32 to vector<2x3xf32>
    %122 = arith.mulf %121, %120 : vector<2x3xf32>
    %cst_30 = arith.constant dense<0xFF800000> : vector<2xf32>
    %123 = vector.multi_reduction <maximumf>, %122, %cst_30 [1] : vector<2x3xf32> to vector<2xf32>
    %124 = vector.shape_cast %123 : vector<2xf32> to vector<2x1xf32>
    %125 = tpu.iota {dimensions = array<i32: 1>} : vector<2x3xi32>
    %126 = vector.broadcast %124 : vector<2x1xf32> to vector<2x3xf32>
    %127 = arith.cmpf oeq, %122, %126 : vector<2x3xf32>
    %c3_i32 = arith.constant 3 : i32
    %128 = vector.broadcast %c3_i32 : i32 to vector<2x3xi32>
    %129 = arith.select %127, %125, %128 : vector<2x3xi1>, vector<2x3xi32>
    %cst_31 = arith.constant dense<2147483647> : vector<2xi32>
    %130 = vector.multi_reduction <minsi>, %129, %cst_31 [1] : vector<2x3xi32> to vector<2xi32>
    %131 = vector.shape_cast %130 : vector<2xi32> to vector<2x1xi32>
    %132 = vector.broadcast %131 : vector<2x1xi32> to vector<2x3xi32>
    %133 = arith.cmpi eq, %125, %132 : vector<2x3xi32>
    %134 = arith.extui %133 : vector<2x3xi1> to vector<2x3xi32>
    %135 = arith.sitofp %134 : vector<2x3xi32> to vector<2x3xf32>
    %c0_32 = arith.constant 0 : index
    %c0_33 = arith.constant 0 : index
    %136 = vector.load %arg1[%c0_32, %c0_33] : memref<2x3xf32, #tpu.memory_space<vmem>>, vector<2x3xf32>
    %137 = vector.extract_strided_slice %102 {offsets = [0, 32], sizes = [2, 32], strides = [1, 1]} : vector<2x96xf32> to vector<2x32xf32>
    %138 = vector.broadcast %9 : vector<1x32xf32> to vector<2x32xf32>
    %139 = arith.addf %137, %138 : vector<2x32xf32>
    %140 = arith.mulf %136, %122 : vector<2x3xf32>
    %cst_34 = arith.constant dense<0.000000e+00> : vector<2x32xf32>
    %141 = tpu.matmul %140, %2, %cst_34 {dimension_numbers = #tpu.dot_dimension_numbers<[1], [0], [0], [1], [0, 0, 1, 1], [], []>} : vector<2x3xf32>, vector<3x32xf32>, vector<2x32xf32> -> vector<2x32xf32>
    %142 = arith.addf %139, %141 : vector<2x32xf32>
    %143 = vector.extract_strided_slice %102 {offsets = [0, 64], sizes = [2, 32], strides = [1, 1]} : vector<2x96xf32> to vector<2x32xf32>
    %144 = vector.broadcast %10 : vector<1x32xf32> to vector<2x32xf32>
    %145 = arith.addf %143, %144 : vector<2x32xf32>
    %146 = arith.mulf %135, %122 : vector<2x3xf32>
    %cst_35 = arith.constant dense<0.000000e+00> : vector<2x32xf32>
    %147 = tpu.matmul %146, %3, %cst_35 {dimension_numbers = #tpu.dot_dimension_numbers<[1], [0], [0], [1], [0, 0, 1, 1], [], []>} : vector<2x3xf32>, vector<3x32xf32>, vector<2x32xf32> -> vector<2x32xf32>
    %148 = arith.addf %145, %147 : vector<2x32xf32>
    %cst_36 = arith.constant 5.000000e-01 : f32
    %149 = vector.broadcast %cst_36 : f32 to vector<2x32xf32>
    %150 = arith.mulf %149, %142 : vector<2x32xf32>
    %151 = math.tanh %150 : vector<2x32xf32>
    %cst_37 = arith.constant 1.000000e+00 : f32
    %152 = vector.broadcast %cst_37 : f32 to vector<2x32xf32>
    %153 = arith.addf %151, %152 : vector<2x32xf32>
    %cst_38 = arith.constant 5.000000e-01 : f32
    %154 = vector.broadcast %cst_38 : f32 to vector<2x32xf32>
    %155 = arith.mulf %154, %153 : vector<2x32xf32>
    %156 = arith.mulf %142, %155 : vector<2x32xf32>
    %cst_39 = arith.constant 5.000000e-01 : f32
    %157 = vector.broadcast %cst_39 : f32 to vector<2x32xf32>
    %158 = arith.mulf %157, %148 : vector<2x32xf32>
    %159 = math.tanh %158 : vector<2x32xf32>
    %cst_40 = arith.constant 1.000000e+00 : f32
    %160 = vector.broadcast %cst_40 : f32 to vector<2x32xf32>
    %161 = arith.addf %159, %160 : vector<2x32xf32>
    %cst_41 = arith.constant 5.000000e-01 : f32
    %162 = vector.broadcast %cst_41 : f32 to vector<2x32xf32>
    %163 = arith.mulf %162, %161 : vector<2x32xf32>
    %164 = arith.mulf %148, %163 : vector<2x32xf32>
    %165 = arith.mulf %136, %122 : vector<2x3xf32>
    %cst_42 = arith.constant dense<0.000000e+00> : vector<2xf32>
    %166 = vector.multi_reduction <add>, %165, %cst_42 [1] : vector<2x3xf32> to vector<2xf32>
    %167 = vector.shape_cast %166 : vector<2xf32> to vector<2x1xf32>
    %cst_43 = arith.constant 0.000000e+00 : f32
    %168 = vector.broadcast %cst_43 : f32 to vector<2x59xf32>
    %169 = tpu.concatenate %122, %156, %164, %167, %124, %168 in 1 : vector<2x3xf32>, vector<2x32xf32>, vector<2x32xf32>, vector<2x1xf32>, vector<2x1xf32>, vector<2x59xf32> -> vector<2x128xf32>
    %c0_44 = arith.constant 0 : index
    %c0_45 = arith.constant 0 : index
    %170 = vector.load %arg6[%c0_44, %c0_45] : memref<2x128xf32, #tpu.memory_space<vmem>>, vector<2x128xf32>
    tpu.vector_store %arg6[%c0_44, %c0_45], %169 {strides = array<i32>} : memref<2x128xf32, #tpu.memory_space<vmem>>, vector<2x128xf32>,
    return
  }
}

</mosaic_0001>

<bundles_post_ra>
// kernel: _fused_forward.1
= control target key start
LH: loop header
LB: loop body
LE: loop exit
PB: predicated region body
PF: predicated region fallthrough
CT: control target
= control target key end

     0   :  { %v2156_v0 = vmov 0.0|0.0   ;;  %vm2157_vm0 = vmmov 0   ;;  %v2158_v6 = vmov 0.0   ;;  %vm141_vm1 = vcmask 1042432   ;;  %s2160_s18 = smov 64   ;;  %s2162_s19 = smov 96   ;;  %s3249_s2 = inlined_call_operand.vmem [shape: f32[75,16], index: 2, kind: input, shape index: {}]   ;;  %s3250_s0 = inlined_call_operand.vmem [shape: f32[200,75], index: 0, kind: input, shape index: {}]   ;;  %s3251_s5 = inlined_call_operand.vmem [shape: f32[56,32], index: 5, kind: input, shape index: {}]   ;;  %s3252_s3 = inlined_call_operand.vmem [shape: f32[400,32], index: 3, kind: input, shape index: {}]   ;;  %s3253_s4 = inlined_call_operand.vmem [shape: f32[288,96], index: 4, kind: input, shape index: {}]   ;;  %s3254_s1 = inlined_call_operand.vmem [shape: f32[2,3], index: 1, kind: input, shape index: {}]   ;;  %s3255_s6 = inlined_call_operand.vmem [shape: f32[2,128], index: 6, kind: output, shape index: {}]  }
   0x1   :  { %1977 = vmatprep.subr.bf16.mxu0 %v2156_v0  ;;  %v55_v1 = vld [vmem:[%s3249_s2] sm:$0xff]  ;;  %v56_v2 = vld [vmem:[%s3249_s2 + $0x8] sm:$0xff]  ;;  %v57_v3 = vld [vmem:[%s3249_s2 + $0x10] sm:$0xff]  ;;  %1870 = vmatprep.mubr.msk.f32.mxu0 %vm2157_vm0, %v2158_v6  ;;  %vm2159_vm2 = vmmov 1   ;;  %vm65_vm4 = vcmask 613376   ;;  %vm335_vm5 = vcmask 130048  }
   0x2   :  { %v1978_v4 = vpack.c.bf16 %v56_v2, %v55_v1  ;;  %v58_v5 = vld [vmem:[%s3249_s2 + $0x18] sm:$0xff]  ;;  %v59_v8 = vld [vmem:[%s3249_s2 + $0x20] sm:$0xff]  ;;  %v60_v9 = vld [vmem:[%s3249_s2 + $0x28] sm:$0xff]  ;;  %s2163_s20 = smov 16   ;;  %s2164_s21 = smov 48   ;;  %vm611_vm6 = vcmask 1043456  }
   0x3   :  { %v1981_v7 = vpack.c.bf16 %v58_v5, %v57_v3  ;;  %v1984_v10 = vpack.c.bf16 %v60_v9, %v59_v8  ;;  %v61_v11 = vld [vmem:[%s3249_s2 + $0x30] sm:$0xff]  ;;  %v62_v12 = vld [vmem:[%s3249_s2 + $0x38] sm:$0xff]  ;;  %v63_v14 = vld [vmem:[%s3249_s2 + $0x40] sm:$0xff]  ;;  %s2165_s22 = smov 80   ;;  %s2166_s23 = smov 112   ;;  %vm730_vm7 = vcmask 261120  }
   0x4   :  { %1979 = vmatpush3.bf16.msra.mxu0 %v1978_v4  ;;  %v1987_v13 = vpack.c.bf16 %v62_v12, %v61_v11  ;;  %v64_v15 = vld [vmem:[%s3249_s2 + $0x48] sm:$0x7]  ;;  %vm1991_vm3 = vmpackc.low %vm141_vm1, %vm2159_vm2  ;;  %v30_v17 = vld [vmem:[%s3250_s0] sm:$0xff]  ;;  %s2161_s2 = smov 32   ;;  %vm734_vm8 = vcmask 392192   ;;  %vm738_vm9 = vcmask 523264  }
   0x5   :  { %1980 = vmatprep.subr.bf16.mxu0 %v2156_v0  ;;  %v1990_v16 = vpack.c.bf16 %v64_v15, %v63_v14  ;;  %v31_v18 = vld [vmem:[%s3250_s0 + $0x8] sm:$0xff]  ;;  %v32_v19 = vld [vmem:[%s3250_s0 + $0x10] sm:$0xff]  ;;  %v33_v20 = vld [vmem:[%s3250_s0 + $0x18] sm:$0xff]  ;;  %vm742_vm10 = vcmask 654336   ;;  %vm746_vm11 = vcmask 785408   ;;  %vm750_vm12 = vcmask 916480  }
   0x6   :  { %v34_v21 = vld [vmem:[%s3250_s0 + $0x20] sm:$0xff]  ;;  %v35_v22 = vld [vmem:[%s3250_s0 + $0x28] sm:$0xff]  ;;  %v36_v23 = vld [vmem:[%s3250_s0 + $0x30] sm:$0xff]  ;;  %vm863_vm13 = vcmask 1045504   ;;  %vm1093_vm14 = vcmask 254976   ;;  %vm1444_vm15 = vcmask 17408  }
   0x7   :  { %v37_v24 = vld [vmem:[%s3250_s0 + $0x38] sm:$0xff]  ;;  %v38_v25 = vld [vmem:[%s3250_s0 + $0x40] sm:$0xff]  ;;  %v39_v26 = vld [vmem:[%s3250_s0 + $0x48] sm:$0xff] }
   0x8   :  { %1982 = vmatpush3.bf16.msra.mxu0 %v1981_v7  ;;  %v40_v27 = vld [vmem:[%s3250_s0 + $0x50] sm:$0xff]  ;;  %v41_v28 = vld [vmem:[%s3250_s0 + $0x58] sm:$0xff]  ;;  %v42_v29 = vld [vmem:[%s3250_s0 + $0x60] sm:$0xff] }
   0x9   :  { %1983 = vmatprep.subr.bf16.mxu0 %v2156_v0  ;;  %v43_v30 = vld [vmem:[%s3250_s0 + $0x68] sm:$0xff]  ;;  %v44_v31 = vld [vmem:[%s3250_s0 + $0x70] sm:$0xff]  ;;  %v45_v32 = vld [vmem:[%s3250_s0 + $0x78] sm:$0xff] }
   0xa   :  { %v46_v33 = vld [vmem:[%s3250_s0 + $0x80] sm:$0xff]  ;;  %v47_v34 = vld [vmem:[%s3250_s0 + $0x88] sm:$0xff]  ;;  %v48_v35 = vld [vmem:[%s3250_s0 + $0x90] sm:$0xff] }
   0xb   :  { %v49_v36 = vld [vmem:[%s3250_s0 + $0x98] sm:$0xff]  ;;  %v50_v37 = vld [vmem:[%s3250_s0 + $0xa0] sm:$0xff]  ;;  %v51_v38 = vld [vmem:[%s3250_s0 + $0xa8] sm:$0xff] }
   0xc   :  { %1985 = vmatpush3.bf16.msra.mxu0 %v1984_v10  ;;  %v52_v39 = vld [vmem:[%s3250_s0 + $0xb0] sm:$0xff]  ;;  %v53_v40 = vld [vmem:[%s3250_s0 + $0xb8] sm:$0xff]  ;;  %v54_v41 = vld [vmem:[%s3250_s0 + $0xc0] sm:$0xff] }
   0xd   :  { %1986 = vmatprep.subr.bf16.mxu0 %v2156_v0 }
  0x10   :  { %1988 = vmatpush3.bf16.msra.mxu0 %v1987_v13 }
  0x11   :  { %1989 = vmatprep.subr.bf16.mxu0 %v2156_v0 }
  0x14   :  { %1992 = vmatpush3.bf16.msk.msra.mxu0 %vm1991_vm3, %v1990_v16 }
  0x15   :  { %1967 = vmatprep.subr.mxu0 %v2158_v6 }
  0x17   :  { %1871 = vmatmul.mubr.msk.f32.vlgmr.msra.gmra.mrb[0].mxu0 %vm65_vm4, %v30_v17 }
  0x18   :  { %1873 = vmatprep.mubr.msk.f32.mxu0 %vm2157_vm0, %v2158_v6 }
  0x1b   :  { %1874 = vmatmul.mubr.msk.f32.gmra.mrb[2].mxu0 %vm65_vm4, %v31_v18 }
  0x1c   :  { %1876 = vmatprep.mubr.msk.f32.mxu0 %vm2157_vm0, %v2158_v6 }
  0x1f   :  { %1877 = vmatmul.mubr.msk.f32.gmra.mrb[4].mxu0 %vm65_vm4, %v32_v19 }
  0x20   :  { %1879 = vmatprep.mubr.msk.f32.mxu0 %vm2157_vm0, %v2158_v6 }
  0x23   :  { %1880 = vmatmul.mubr.msk.f32.gmra.mrb[6].mxu0 %vm65_vm4, %v33_v20 }
  0x24   :  { %1882 = vmatprep.mubr.msk.f32.mxu0 %vm2157_vm0, %v2158_v6 }
  0x27   :  { %1883 = vmatmul.mubr.msk.f32.gmra.mrb[8].mxu0 %vm65_vm4, %v34_v21 }
  0x28   :  { %1885 = vmatprep.mubr.msk.f32.mxu0 %vm2157_vm0, %v2158_v6 }
  0x2b   :  { %1886 = vmatmul.mubr.msk.f32.gmra.mrb[10].mxu0 %vm65_vm4, %v35_v22 }
  0x2c   :  { %1888 = vmatprep.mubr.msk.f32.mxu0 %vm2157_vm0, %v2158_v6 }
  0x2f   :  { %1889 = vmatmul.mubr.msk.f32.gmra.mrb[12].mxu0 %vm65_vm4, %v36_v23 }
  0x30   :  { %1891 = vmatprep.mubr.msk.f32.mxu0 %vm2157_vm0, %v2158_v6 }
  0x33   :  { %1892 = vmatmul.mubr.msk.f32.gmra.mrb[14].mxu0 %vm65_vm4, %v37_v24 }
  0x34   :  { %1894 = vmatprep.mubr.msk.f32.mxu0 %vm2157_vm0, %v2158_v6 }
  0x37   :  { %1895 = vmatmul.mubr.msk.f32.gmra.mrb[16].mxu0 %vm65_vm4, %v38_v25 }
  0x38   :  { %1897 = vmatprep.mubr.msk.f32.mxu0 %vm2157_vm0, %v2158_v6 }
  0x3b   :  { %1898 = vmatmul.mubr.msk.f32.gmra.mrb[18].mxu0 %vm65_vm4, %v39_v26 }
  0x3c   :  { %1900 = vmatprep.mubr.msk.f32.mxu0 %vm2157_vm0, %v2158_v6 }
  0x3f   :  { %1901 = vmatmul.mubr.msk.f32.gmra.mrb[20].mxu0 %vm65_vm4, %v40_v27 }
  0x40   :  { %1903 = vmatprep.mubr.msk.f32.mxu0 %vm2157_vm0, %v2158_v6 }
  0x43   :  { %1904 = vmatmul.mubr.msk.f32.gmra.mrb[22].mxu0 %vm65_vm4, %v41_v28 }
  0x44   :  { %1906 = vmatprep.mubr.msk.f32.mxu0 %vm2157_vm0, %v2158_v6 }
  0x47   :  { %1907 = vmatmul.mubr.msk.f32.gmra.mrb[24].mxu0 %vm65_vm4, %v42_v29 }
  0x48   :  { %1909 = vmatprep.mubr.msk.f32.mxu0 %vm2157_vm0, %v2158_v6 }
  0x4b   :  { %1910 = vmatmul.mubr.msk.f32.gmra.mrb[26].mxu0 %vm65_vm4, %v43_v30 }
  0x4c   :  { %1912 = vmatprep.mubr.msk.f32.mxu0 %vm2157_vm0, %v2158_v6 }
  0x4f   :  { %1913 = vmatmul.mubr.msk.f32.gmra.mrb[28].mxu0 %vm65_vm4, %v44_v31 }
  0x50   :  { %1915 = vmatprep.mubr.msk.f32.mxu0 %vm2157_vm0, %v2158_v6 }
  0x53   :  { %1916 = vmatmul.mubr.msk.f32.gmra.mrb[30].mxu0 %vm65_vm4, %v45_v32 }
  0x54   :  { %1918 = vmatprep.mubr.msk.f32.mxu0 %vm2157_vm0, %v2158_v6 }
  0x57   :  { %1919 = vmatmul.mubr.msk.f32.gmra.mrb[32].mxu0 %vm65_vm4, %v46_v33 }
  0x58   :  { %1921 = vmatprep.mubr.msk.f32.mxu0 %vm2157_vm0, %v2158_v6 }
  0x5b   :  { %1922 = vmatmul.mubr.msk.f32.gmra.mrb[34].mxu0 %vm65_vm4, %v47_v34 }
  0x5c   :  { %1924 = vmatprep.mubr.msk.f32.mxu0 %vm2157_vm0, %v2158_v6 }
  0x5f   :  { %1925 = vmatmul.mubr.msk.f32.gmra.mrb[36].mxu0 %vm65_vm4, %v48_v35 }
  0x60   :  { %1927 = vmatprep.mubr.msk.f32.mxu0 %vm2157_vm0, %v2158_v6 }
  0x63   :  { %1928 = vmatmul.mubr.msk.f32.gmra.mrb[38].mxu0 %vm65_vm4, %v49_v36 }
  0x64   :  { %1930 = vmatprep.mubr.msk.f32.mxu0 %vm2157_vm0, %v2158_v6 }
  0x67   :  { %1931 = vmatmul.mubr.msk.f32.gmra.mrb[40].mxu0 %vm65_vm4, %v50_v37 }
  0x68   :  { %1933 = vmatprep.mubr.msk.f32.mxu0 %vm2157_vm0, %v2158_v6 }
  0x6b   :  { %1934 = vmatmul.mubr.msk.f32.gmra.mrb[42].mxu0 %vm65_vm4, %v51_v38 }
  0x6c   :  { %1936 = vmatprep.mubr.msk.f32.mxu0 %vm2157_vm0, %v2158_v6 }
  0x6f   :  { %1937 = vmatmul.mubr.msk.f32.gmra.mrb[44].mxu0 %vm65_vm4, %v52_v39 }
  0x70   :  { %1939 = vmatprep.mubr.msk.f32.mxu0 %vm2157_vm0, %v2158_v6 }
  0x73   :  { %1940 = vmatmul.mubr.msk.f32.gmra.mrb[46].mxu0 %vm65_vm4, %v53_v40 }
  0x74   :  { %1942 = vmatprep.mubr.msk.f32.mxu0 %vm2157_vm0, %v2158_v6 }
  0x77   :  { %1943 = vmatmul.mubr.msk.f32.gmra.mrb[48].mxu0 %vm65_vm4, %v54_v41 }
  0x78   :  { %1969 = vmatprep.mubr.msk.f32.mxu0 %vm2157_vm0, %v2158_v6 }
  0xea   :  { %v2392_v42 = vpop.f32.mrb[0].mxu0 }
  0xeb   :  { %v1872_v43 = vpop.f32.mrb[1].mxu0  ;;  %v336_v45 = vsel %vm335_vm5, %v2392_v42, 0.0 }
  0xee   :  { %v2394_v44 = vpop.f32.mrb[2].mxu0 }
  0xef   :  { %v337_v46 = vsel %vm335_vm5, %v2394_v44, 0.0  ;;  %v1875_v47 = vpop.f32.mrb[3].mxu0 }
  0xf0   :  { %v338_v48 = vadd.f32 %v337_v46, %v336_v45 }
  0xf2   :  { %v2400_v49 = vpop.f32.mrb[4].mxu0 }
  0xf3   :  { %v339_v50 = vsel %vm335_vm5, %v2400_v49, 0.0  ;;  %v1878_v51 = vpop.f32.mrb[5].mxu0 }
  0xf4   :  { %v340_v52 = vadd.f32 %v339_v50, %v338_v48 }
  0xf6   :  { %v2404_v53 = vpop.f32.mrb[6].mxu0 }
  0xf7   :  { %v341_v54 = vsel %vm335_vm5, %v2404_v53, 0.0  ;;  %v1881_v55 = vpop.f32.mrb[7].mxu0 }
  0xf8   :  { %v342_v56 = vadd.f32 %v341_v54, %v340_v52 }
  0xfa   :  { %v2408_v57 = vpop.f32.mrb[8].mxu0 }
  0xfb   :  { %v343_v58 = vsel %vm335_vm5, %v2408_v57, 0.0  ;;  %v1884_v59 = vpop.f32.mrb[9].mxu0 }
  0xfc   :  { %v344_v60 = vadd.f32 %v343_v58, %v342_v56 }
  0xfe   :  { %v2412_v61 = vpop.f32.mrb[10].mxu0 }
  0xff   :  { %v345_v62 = vsel %vm335_vm5, %v2412_v61, 0.0  ;;  %v1887_v63 = vpop.f32.mrb[11].mxu0 }
 0x100   :  { %v346_v1 = vadd.f32 %v345_v62, %v344_v60 }
 0x102   :  { %v2416_v2 = vpop.f32.mrb[12].mxu0 }
 0x103   :  { %v347_v3 = vsel %vm335_vm5, %v2416_v2, 0.0  ;;  %v1890_v4 = vpop.f32.mrb[13].mxu0 }
 0x104   :  { %v348_v5 = vadd.f32 %v347_v3, %v346_v1 }
 0x106   :  { %v2420_v7 = vpop.f32.mrb[14].mxu0 }
 0x107   :  { %v349_v8 = vsel %vm335_vm5, %v2420_v7, 0.0  ;;  %v1893_v9 = vpop.f32.mrb[15].mxu0 }
 0x108   :  { %v350_v10 = vadd.f32 %v349_v8, %v348_v5 }
 0x10a   :  { %v2424_v11 = vpop.f32.mrb[16].mxu0 }
 0x10b   :  { %v351_v12 = vsel %vm335_vm5, %v2424_v11, 0.0  ;;  %v1896_v13 = vpop.f32.mrb[17].mxu0 }
 0x10c   :  { %v352_v14 = vadd.f32 %v351_v12, %v350_v10 }
 0x10e   :  { %v2428_v15 = vpop.f32.mrb[18].mxu0 }
 0x10f   :  { %v353_v16 = vsel %vm335_vm5, %v2428_v15, 0.0  ;;  %v1899_v17 = vpop.f32.mrb[19].mxu0 }
 0x110   :  { %v354_v18 = vadd.f32 %v353_v16, %v352_v14 }
 0x112   :  { %v2432_v19 = vpop.f32.mrb[20].mxu0 }
 0x113   :  { %v355_v20 = vsel %vm335_vm5, %v2432_v19, 0.0  ;;  %v1902_v21 = vpop.f32.mrb[21].mxu0 }
 0x114   :  { %v356_v22 = vadd.f32 %v355_v20, %v354_v18 }
 0x116   :  { %v2436_v23 = vpop.f32.mrb[22].mxu0 }
 0x117   :  { %v357_v24 = vsel %vm335_vm5, %v2436_v23, 0.0  ;;  %v1905_v25 = vpop.f32.mrb[23].mxu0 }
 0x118   :  { %v358_v26 = vadd.f32 %v357_v24, %v356_v22 }
 0x11a   :  { %v2440_v27 = vpop.f32.mrb[24].mxu0 }
 0x11b   :  { %v359_v28 = vsel %vm335_vm5, %v2440_v27, 0.0  ;;  %v1908_v29 = vpop.f32.mrb[25].mxu0 }
 0x11c   :  { %v360_v30 = vadd.f32 %v359_v28, %v358_v26 }
 0x11e   :  { %v2444_v31 = vpop.f32.mrb[26].mxu0 }
 0x11f   :  { %v361_v32 = vsel %vm335_vm5, %v2444_v31, 0.0  ;;  %v1911_v33 = vpop.f32.mrb[27].mxu0 }
 0x120   :  { %v362_v34 = vadd.f32 %v361_v32, %v360_v30 }
 0x122   :  { %v2448_v35 = vpop.f32.mrb[28].mxu0 }
 0x123   :  { %v363_v36 = vsel %vm335_vm5, %v2448_v35, 0.0  ;;  %v1914_v37 = vpop.f32.mrb[29].mxu0 }
 0x124   :  { %v364_v38 = vadd.f32 %v363_v36, %v362_v34 }
 0x126   :  { %v286_v39 = vpop.f32.mrb[30].mxu0 }
 0x127   :  { %v365_v40 = vsel %vm335_vm5, %v286_v39, 0.0  ;;  %v1917_v41 = vpop.f32.mrb[31].mxu0 }
 0x128   :  { %v366_v43 = vadd.f32 %v365_v40, %v364_v38 }
 0x12a   :  { %v291_v45 = vpop.f32.mrb[32].mxu0 }
 0x12b   :  { %v367_v46 = vsel %vm335_vm5, %v291_v45, 0.0  ;;  %v1920_v47 = vpop.f32.mrb[33].mxu0 }
 0x12c   :  { %v368_v48 = vadd.f32 %v367_v46, %v366_v43 }
 0x12e   :  { %v296_v50 = vpop.f32.mrb[34].mxu0 }
 0x12f   :  { %v369_v51 = vsel %vm335_vm5, %v296_v50, 0.0  ;;  %v1923_v52 = vpop.f32.mrb[35].mxu0 }
 0x130   :  { %v370_v54 = vadd.f32 %v369_v51, %v368_v48 }
 0x132   :  { %v301_v55 = vpop.f32.mrb[36].mxu0 }
 0x133   :  { %v371_v56 = vsel %vm335_vm5, %v301_v55, 0.0  ;;  %v1926_v58 = vpop.f32.mrb[37].mxu0 }
 0x134   :  { %v372_v59 = vadd.f32 %v371_v56, %v370_v54 }
 0x136   :  { %v306_v60 = vpop.f32.mrb[38].mxu0 }
 0x137   :  { %v373_v62 = vsel %vm335_vm5, %v306_v60, 0.0  ;;  %v1929_v63 = vpop.f32.mrb[39].mxu0 }
 0x138   :  { %v374_v1 = vadd.f32 %v373_v62, %v372_v59 }
 0x13a   :  { %v311_v3 = vpop.f32.mrb[40].mxu0 }
 0x13b   :  { %v375_v4 = vsel %vm335_vm5, %v311_v3, 0.0  ;;  %v1932_v5 = vpop.f32.mrb[41].mxu0 }
 0x13c   :  { %v376_v8 = vadd.f32 %v375_v4, %v374_v1 }
 0x13e   :  { %v316_v9 = vpop.f32.mrb[42].mxu0 }
 0x13f   :  { %v377_v10 = vsel %vm335_vm5, %v316_v9, 0.0  ;;  %v1935_v12 = vpop.f32.mrb[43].mxu0 }
 0x140   :  { %v378_v13 = vadd.f32 %v377_v10, %v376_v8 }
 0x142   :  { %v321_v14 = vpop.f32.mrb[44].mxu0 }
 0x143   :  { %v379_v16 = vsel %vm335_vm5, %v321_v14, 0.0  ;;  %v1938_v17 = vpop.f32.mrb[45].mxu0 }
 0x144   :  { %v380_v18 = vadd.f32 %v379_v16, %v378_v13 }
 0x146   :  { %v326_v20 = vpop.f32.mrb[46].mxu0 }
 0x147   :  { %v381_v21 = vsel %vm335_vm5, %v326_v20, 0.0  ;;  %v1941_v22 = vpop.f32.mrb[47].mxu0 }
 0x148   :  { %v382_v24 = vadd.f32 %v381_v21, %v380_v18 }
 0x14a   :  { %v331_v25 = vpop.f32.mrb[48].mxu0 }
 0x14b   :  { %v383_v26 = vsel %vm335_vm5, %v331_v25, 0.0  ;;  %v1944_v28 = vpop.f32.mrb[49].mxu0 }
 0x14c   :  { %v384_v29 = vadd.f32 %v383_v26, %v382_v24 }
 0x14e   :  { %v385_v30 = vrot.slane %v384_v29, 4 }
 0x150   :  { %v386_v32 = vadd.f32 %v385_v30, %v384_v29 }
 0x152   :  { %v387_v33 = vrot.slane %v386_v32, 2 }
 0x154   :  { %v388_v34 = vadd.f32 %v387_v33, %v386_v32 }
 0x156   :  { %v389_v36 = vrot.slane %v388_v34, 1 }
 0x158   :  { %v390_v37 = vadd.f32 %v389_v36, %v388_v34 }
 0x15a   :  { %v391_v38 = vmul.f32 0.005, %v390_v37 }
 0x15c   :  { %v2463_v40 = vsub.f32 %v2392_v42, %v391_v38  ;;  %v2466_v41 = vsub.f32 %v2394_v44, %v391_v38  ;;  %v2469_v43 = vsub.f32 %v2400_v49, %v391_v38  ;;  %v2472_v46 = vsub.f32 %v2404_v53, %v391_v38 }
 0x15d   :  { %v2475_v47 = vsub.f32 %v2408_v57, %v391_v38  ;;  %v2478_v48 = vsub.f32 %v2412_v61, %v391_v38  ;;  %v2481_v51 = vsub.f32 %v2416_v2, %v391_v38  ;;  %v2484_v42 = vsub.f32 %v2420_v7, %v391_v38 }
 0x15e   :  { %v2487_v44 = vsub.f32 %v2424_v11, %v391_v38  ;;  %v2490_v49 = vsub.f32 %v2428_v15, %v391_v38  ;;  %v2493_v53 = vsub.f32 %v2432_v19, %v391_v38  ;;  %v2496_v57 = vsub.f32 %v2436_v23, %v391_v38 }
 0x15f   :  { %v2499_v61 = vsub.f32 %v2440_v27, %v391_v38  ;;  %v2502_v2 = vsub.f32 %v2444_v31, %v391_v38  ;;  %v2505_v7 = vsub.f32 %v2448_v35, %v391_v38  ;;  %v2507_v11 = vsub.f32 %v286_v39, %v391_v38 }
 0x160   :  { %v2509_v52 = vsub.f32 %v291_v45, %v391_v38  ;;  %v2511_v15 = vsub.f32 %v296_v50, %v391_v38  ;;  %v2513_v19 = vsub.f32 %v301_v55, %v391_v38  ;;  %v2515_v54 = vsub.f32 %v306_v60, %v391_v38 }
 0x161   :  { %v2517_v23 = vsub.f32 %v311_v3, %v391_v38  ;;  %v2519_v27 = vsub.f32 %v316_v9, %v391_v38  ;;  %v2521_v56 = vsub.f32 %v321_v14, %v391_v38  ;;  %v2523_v31 = vsub.f32 %v326_v20, %v391_v38 }
 0x162   :  { %v2525_v35 = vsub.f32 %v331_v25, %v391_v38  ;;  %v417_v39 = vmul.f32 %v2463_v40, %v2463_v40  ;;  %v418_v45 = vmul.f32 %v2466_v41, %v2466_v41  ;;  %v419_v50 = vmul.f32 %v2469_v43, %v2469_v43 }
 0x163   :  { %v420_v55 = vmul.f32 %v2472_v46, %v2472_v46  ;;  %v421_v62 = vmul.f32 %v2475_v47, %v2475_v47  ;;  %v422_v3 = vmul.f32 %v2478_v48, %v2478_v48  ;;  %v423_v8 = vmul.f32 %v2481_v51, %v2481_v51 }
 0x164   :  { %v442_v58 = vsel %vm335_vm5, %v417_v39, 0.0  ;;  %v443_v59 = vsel %vm335_vm5, %v418_v45, 0.0  ;;  %v445_v63 = vsel %vm335_vm5, %v419_v50, 0.0  ;;  %v424_v12 = vmul.f32 %v2484_v42, %v2484_v42 }
 0x165   :  { %v444_v60 = vadd.f32 %v443_v59, %v442_v58  ;;  %v447_v4 = vsel %vm335_vm5, %v420_v55, 0.0  ;;  %v449_v9 = vsel %vm335_vm5, %v421_v62, 0.0  ;;  %v451_v13 = vsel %vm335_vm5, %v422_v3, 0.0 }
 0x166   :  { %v425_v16 = vmul.f32 %v2487_v44, %v2487_v44  ;;  %v453_v17 = vsel %vm335_vm5, %v423_v8, 0.0  ;;  %v426_v20 = vmul.f32 %v2490_v49, %v2490_v49  ;;  %v455_v21 = vsel %vm335_vm5, %v424_v12, 0.0 }
 0x167   :  { %v446_v1 = vadd.f32 %v445_v63, %v444_v60  ;;  %v427_v24 = vmul.f32 %v2493_v53, %v2493_v53  ;;  %v428_v28 = vmul.f32 %v2496_v57, %v2496_v57  ;;  %v429_v32 = vmul.f32 %v2499_v61, %v2499_v61 }
 0x168   :  { %v457_v25 = vsel %vm335_vm5, %v425_v16, 0.0  ;;  %v459_v29 = vsel %vm335_vm5, %v426_v20, 0.0  ;;  %v430_v36 = vmul.f32 %v2502_v2, %v2502_v2  ;;  %v431_v39 = vmul.f32 %v2505_v7, %v2505_v7 }
 0x169   :  { %v448_v5 = vadd.f32 %v447_v4, %v446_v1  ;;  %v461_v33 = vsel %vm335_vm5, %v427_v24, 0.0  ;;  %v463_v37 = vsel %vm335_vm5, %v428_v28, 0.0  ;;  %v465_v45 = vsel %vm335_vm5, %v429_v32, 0.0 }
 0x16a   :  { %v432_v55 = vmul.f32 %v2507_v11, %v2507_v11  ;;  %v467_v58 = vsel %vm335_vm5, %v430_v36, 0.0  ;;  %v433_v60 = vmul.f32 %v2509_v52, %v2509_v52  ;;  %v469_v62 = vsel %vm335_vm5, %v431_v39, 0.0 }
 0x16b   :  { %v450_v10 = vadd.f32 %v449_v9, %v448_v5  ;;  %v434_v1 = vmul.f32 %v2511_v15, %v2511_v15  ;;  %v435_v5 = vmul.f32 %v2513_v19, %v2513_v19 }
 0x16c   :  { %v471_v3 = vsel %vm335_vm5, %v432_v55, 0.0  ;;  %v473_v8 = vsel %vm335_vm5, %v433_v60, 0.0 }
 0x16d   :  { %v452_v14 = vadd.f32 %v451_v13, %v450_v10  ;;  %v436_v10 = vmul.f32 %v2515_v54, %v2515_v54  ;;  %v475_v12 = vsel %vm335_vm5, %v434_v1, 0.0  ;;  %v477_v16 = vsel %vm335_vm5, %v435_v5, 0.0 }
 0x16f   :  { %v454_v18 = vadd.f32 %v453_v17, %v452_v14  ;;  %v437_v14 = vmul.f32 %v2517_v23, %v2517_v23  ;;  %v479_v20 = vsel %vm335_vm5, %v436_v10, 0.0 }
 0x171   :  { %v456_v22 = vadd.f32 %v455_v21, %v454_v18  ;;  %v438_v18 = vmul.f32 %v2519_v27, %v2519_v27  ;;  %v481_v24 = vsel %vm335_vm5, %v437_v14, 0.0 }
 0x173   :  { %v458_v26 = vadd.f32 %v457_v25, %v456_v22  ;;  %v439_v22 = vmul.f32 %v2521_v56, %v2521_v56  ;;  %v483_v28 = vsel %vm335_vm5, %v438_v18, 0.0 }
 0x175   :  { %v460_v30 = vadd.f32 %v459_v29, %v458_v26  ;;  %v440_v26 = vmul.f32 %v2523_v31, %v2523_v31  ;;  %v485_v32 = vsel %vm335_vm5, %v439_v22, 0.0 }
 0x177   :  { %v462_v34 = vadd.f32 %v461_v33, %v460_v30  ;;  %v441_v30 = vmul.f32 %v2525_v35, %v2525_v35 }
 0x179   :  { %v464_v38 = vadd.f32 %v463_v37, %v462_v34  ;;  %v487_v34 = vsel %vm335_vm5, %v440_v26, 0.0  ;;  %v489_v37 = vsel %vm335_vm5, %v441_v30, 0.0 }
 0x17b   :  { %v466_v50 = vadd.f32 %v465_v45, %v464_v38 }
 0x17d   :  { %v468_v59 = vadd.f32 %v467_v58, %v466_v50 }
 0x17f   :  { %v470_v63 = vadd.f32 %v469_v62, %v468_v59  ;;  %v525_v62 = vlaneseq }
 0x181   :  { %v472_v4 = vadd.f32 %v471_v3, %v470_v63  ;;  %v2603_v1 = vshrl.u32 %v525_v62, 7 }
 0x183   :  { %v474_v9 = vadd.f32 %v473_v8, %v472_v4  ;;  %v527_v3 = vsub.s32 0, %v2603_v1  ;;  %v29_v4 = vld [vmem:[%s3251_s5 + $0x30] sm:$0xff]  ;;  %v556_v5 = vsub.s32 1, %v2603_v1 }
 0x185   :  { %v476_v13 = vadd.f32 %v475_v12, %v474_v9  ;;  %v2610_v8 = vrot.slane %v29_v4, %v527_v3  ;;  %v2616_v12 = vrot.slane %v29_v4, %v556_v5 }
 0x187   :  { %v478_v17 = vadd.f32 %v477_v16, %v476_v13 }
 0x189   :  { %v480_v21 = vadd.f32 %v479_v20, %v478_v17 }
 0x18b   :  { %v482_v25 = vadd.f32 %v481_v24, %v480_v21 }
 0x18d   :  { %v484_v29 = vadd.f32 %v483_v28, %v482_v25 }
 0x18f   :  { %v486_v33 = vadd.f32 %v485_v32, %v484_v29 }
 0x191   :  { %v488_v36 = vadd.f32 %v487_v34, %v486_v33 }
 0x193   :  { %v490_v38 = vadd.f32 %v489_v37, %v488_v36 }
 0x195   :  { %v491_v39 = vrot.slane %v490_v38, 4 }
 0x197   :  { %v492_v45 = vadd.f32 %v491_v39, %v490_v38 }
 0x199   :  { %v493_v50 = vrot.slane %v492_v45, 2 }
 0x19b   :  { %v494_v55 = vadd.f32 %v493_v50, %v492_v45 }
 0x19d   :  { %v495_v58 = vrot.slane %v494_v55, 1 }
 0x19f   :  { %v496_v59 = vadd.f32 %v495_v58, %v494_v55 }
 0x1a1   :  { %v497_v60 = vmul.f32 0.005, %v496_v59 }
 0x1a3   :  { %v498_v63 = vadd.f32 1e-05, %v497_v60 }
 0x1a5   :  { %2143 = vrsqrt.f32 %v498_v63 }
 0x1af   :  { %v2612_v9 = vpop.eup %2143 }
 0x1b0   :  { %v511_v10 = vmul.f32 %v2612_v9, %v2496_v57  ;;  %v506_v13 = vmul.f32 %v2612_v9, %v2481_v51  ;;  %v516_v14 = vmul.f32 %v2612_v9, %v2509_v52  ;;  %v507_v16 = vmul.f32 %v2612_v9, %v2484_v42 }
 0x1b1   :  { %v505_v17 = vmul.f32 %v2612_v9, %v2478_v48  ;;  %v504_v18 = vmul.f32 %v2612_v9, %v2475_v47  ;;  %v512_v52 = vmul.f32 %v2612_v9, %v2499_v61  ;;  %v509_v47 = vmul.f32 %v2612_v9, %v2490_v49 }
 0x1b2   :  { %v540_v20 = vmul.f32 %v2610_v8, %v511_v10  ;;  %v535_v57 = vmul.f32 %v2610_v8, %v506_v13  ;;  %v545_v21 = vmul.f32 %v2610_v8, %v516_v14  ;;  %v536_v51 = vmul.f32 %v2610_v8, %v507_v16 }
 0x1b3   :  { %v533_v22 = vmul.f32 %v2610_v8, %v504_v18  ;;  %v534_v24 = vmul.f32 %v2610_v8, %v505_v17  ;;  %v538_v61 = vmul.f32 %v2610_v8, %v509_v47  ;;  %v541_v49 = vmul.f32 %v2610_v8, %v512_v52 }
 0x1b4   :  { %v569_v42 = vadd.f32 %v2616_v12, %v540_v20  ;;  %v564_v48 = vadd.f32 %v2616_v12, %v535_v57  ;;  %v574_v25 = vadd.f32 %v2616_v12, %v545_v21  ;;  %v2642_v26 = vadd.f32 %v2616_v12, %v536_v51 }
 0x1b5   :  { %v562_v30 = vadd.f32 %v2616_v12, %v533_v22  ;;  %v563_v32 = vadd.f32 %v2616_v12, %v534_v24  ;;  %v514_v33 = vmul.f32 %v2612_v9, %v2505_v7  ;;  %v567_v36 = vadd.f32 %v2616_v12, %v538_v61 }
 0x1b6   :  { %v594_v28 = vmax.f32 %v569_v42, 0.0  ;;  %v589_v29 = vmax.f32 %v564_v48, 0.0  ;;  %v599_v34 = vmax.f32 %v574_v25, 0.0  ;;  %v510_v37 = vmul.f32 %v2612_v9, %v2493_v53 }
 0x1b7   :  { %v590_v38 = vmax.f32 %v2642_v26, 0.0  ;;  %v587_v39 = vmax.f32 %v562_v30, 0.0  ;;  %v543_v45 = vmul.f32 %v2610_v8, %v514_v33  ;;  %v519_v50 = vmul.f32 %v2612_v9, %v2515_v54 }
 0x1b8   :  { %659 = vrot.lane.b32.xlu0 %v594_v28, %s2160_s18  ;;  %631 = vrot.lane.b32.xlu1 %v589_v29, %s2161_s2  ;;  %v508_v55 = vmul.f32 %v2612_v9, %v2487_v44  ;;  %v503_v7 = vmul.f32 %v2612_v9, %v2472_v46  ;;  %v588_v53 = vmax.f32 %v563_v32, 0.0  ;;  %v2668_v58 = vadd.f32 %v2616_v12, %v541_v49 }
 0x1b9   :  { %v517_v54 = vmul.f32 %v2612_v9, %v2511_v15  ;;  %v548_v59 = vmul.f32 %v2610_v8, %v519_v50  ;;  %v592_v44 = vmax.f32 %v567_v36, 0.0  ;;  %v539_v60 = vmul.f32 %v2610_v8, %v510_v37 }
 0x1ba   :  { %v537_v46 = vmul.f32 %v2610_v8, %v508_v55  ;;  %v513_v63 = vmul.f32 %v2612_v9, %v2502_v2  ;;  %v615_v3 = vrot.slane %v587_v39, 4  ;;  %v572_v4 = vadd.f32 %v2616_v12, %v543_v45 }
 0x1bb   :  { %v577_v5 = vadd.f32 %v2616_v12, %v548_v59  ;;  %v532_v10 = vmul.f32 %v2610_v8, %v503_v7  ;;  %v502_v15 = vmul.f32 %v2612_v9, %v2469_v43  ;;  %v595_v13 = vmax.f32 %v2668_v58, 0.0 }
 0x1bc   :  { %687 = vrot.lane.b32.xlu0 %v599_v34, %s2162_s19  ;;  %633 = vrot.lane.b32.xlu1 %v590_v38, %s2161_s2  ;;  %v546_v14 = vmul.f32 %v2610_v8, %v517_v54  ;;  %v518_v2 = vmul.f32 %v2612_v9, %v2513_v19  ;;  %v643_v16 = vrot.slane %v592_v44, 4  ;;  %v568_v17 = vadd.f32 %v2616_v12, %v539_v60 }
 0x1bd   :  { %v566_v18 = vadd.f32 %v2616_v12, %v537_v46  ;;  %v542_v20 = vmul.f32 %v2610_v8, %v513_v63  ;;  %v597_v43 = vmax.f32 %v572_v4, 0.0  ;;  %v602_v57 = vmax.f32 %v577_v5, 0.0 }
 0x1be   :  { %v561_v21 = vadd.f32 %v2616_v12, %v532_v10  ;;  %v547_v51 = vmul.f32 %v2610_v8, %v518_v2  ;;  %v531_v22 = vmul.f32 %v2610_v8, %v502_v15  ;;  %v593_v52 = vmax.f32 %v568_v17, 0.0 }
 0x1bf   :  { %v2700_v42 = vadd.f32 %v2616_v12, %v546_v14  ;;  %v591_v48 = vmax.f32 %v566_v18, 0.0  ;;  %v571_v24 = vadd.f32 %v2616_v12, %v542_v20  ;;  %v671_v47 = vrot.slane %v597_v43, 4 }
 0x1c0   :  { %629 = vrot.lane.b32.xlu1 %v588_v53, %s2161_s2  ;;  %621 = vrot.lane.b32.xlu0 %v615_v3, %s2163_s20  ;;  %v576_v19 = vadd.f32 %v2616_v12, %v547_v51  ;;  %v699_v25 = vrot.slane %v602_v57, 4  ;;  %v586_v28 = vmax.f32 %v561_v21, 0.0  ;;  %v2704_v30 = vadd.f32 %v2616_v12, %v531_v22 }
 0x1c1   :  { %v641_v32 = vrot.slane %v591_v48, 4  ;;  %v596_v49 = vmax.f32 %v571_v24, 0.0  ;;  %v524_v33 = vmul.f32 %v2612_v9, %v2525_v35  ;;  %v600_v34 = vmax.f32 %v2700_v42, 0.0  ;;  %v888_v42 = vld [vmem:[%s3252_s3 + $0x80] sm:$0xff]  ;;  %v889_v48 = vld [vmem:[%s3252_s3 + $0x88] sm:$0xff] }
 0x1c2   :  { %v601_v29 = vmax.f32 %v576_v19, 0.0  ;;  %v613_v36 = vrot.slane %v586_v28, 4  ;;  %v585_v39 = vmax.f32 %v2704_v30, 0.0  ;;  %v522_v45 = vmul.f32 %v2612_v9, %v2521_v56  ;;  %v872_v24 = vld [vmem:[%s3252_s3] sm:$0xff]  ;;  %v890_v28 = vld [vmem:[%s3252_s3 + $0x90] sm:$0xff]  ;;  %v899_v30 = vld [vmem:[%s3252_s3 + $0xd8] sm:$0xff] }
 0x1c3   :  { %v523_v50 = vmul.f32 %v2612_v9, %v2523_v31  ;;  %v501_v55 = vmul.f32 %v2612_v9, %v2466_v41  ;;  %v500_v35 = vmul.f32 %v2612_v9, %v2463_v40  ;;  %v520_v7 = vmul.f32 %v2612_v9, %v2517_v23 }
 0x1c4   :  { %661 = vrot.lane.b32.xlu1 %v595_v13, %s2160_s18  ;;  %649 = vrot.lane.b32.xlu0 %v643_v16, %s2164_s21  ;;  %v697_v61 = vrot.slane %v601_v29, 4  ;;  %v521_v56 = vmul.f32 %v2612_v9, %v2519_v27  ;;  %v644_v53 = vsel %vm611_vm6, %v641_v32, %v643_v16  ;;  %v669_v31 = vrot.slane %v596_v49, 4  ;;  %v891_v29 = vld [vmem:[%s3252_s3 + $0x98] sm:$0xff]  ;;  %v874_v49 = vld [vmem:[%s3252_s3 + $0x10] sm:$0xff] }
 0x1c5   :  { %v515_v41 = vmul.f32 %v2612_v9, %v2507_v11  ;;  %v530_v54 = vmul.f32 %v2610_v8, %v501_v55  ;;  %v616_v59 = vsel %vm611_vm6, %v613_v36, %v615_v3  ;;  %v529_v44 = vmul.f32 %v2610_v8, %v500_v35  ;;  %v877_v55 = vld [vmem:[%s3252_s3 + $0x28] sm:$0xff]  ;;  %v894_v35 = vld [vmem:[%s3252_s3 + $0xb0] sm:$0xff] }
 0x1c6   :  { %v700_v37 = vsel %vm611_vm6, %v697_v61, %v699_v25  ;;  %v549_v40 = vmul.f32 %v2610_v8, %v520_v7  ;;  %v550_v60 = vmul.f32 %v2610_v8, %v521_v56  ;;  %v612_v23 = vrot.slane %v585_v39, 4  ;;  %v895_v7 = vld [vmem:[%s3252_s3 + $0xb8] sm:$0xff] }
 0x1c7   :  { %v551_v27 = vmul.f32 %v2610_v8, %v522_v45  ;;  %v552_v46 = vmul.f32 %v2610_v8, %v523_v50  ;;  %v2740_v63 = vadd.f32 %v2616_v12, %v530_v54  ;;  %v2745_v11 = vadd.f32 %v2616_v12, %v529_v44  ;;  %v876_v50 = vld [vmem:[%s3252_s3 + $0x20] sm:$0xff] }
 0x1c8   :  { %657 = vrot.lane.b32.xlu1 %v593_v52, %s2160_s18  ;;  %677 = vrot.lane.b32.xlu0 %v671_v47, %s2165_s22  ;;  %v2748_v9 = vadd.f32 %v2616_v12, %v549_v40  ;;  %v2751_v3 = vadd.f32 %v2616_v12, %v550_v60  ;;  %v553_v4 = vmul.f32 %v2610_v8, %v524_v33  ;;  %v640_v5 = vrot.slane %v590_v38, 4  ;;  %v875_v33 = vld [vmem:[%s3252_s3 + $0x18] sm:$0xff]  ;;  %v896_v54 = vld [vmem:[%s3252_s3 + $0xc0] sm:$0xff] }
 0x1c9   :  { %v544_v10 = vmul.f32 %v2610_v8, %v515_v41  ;;  %v672_v15 = vsel %vm611_vm6, %v669_v31, %v671_v47  ;;  %v614_v14 = vsel %vm611_vm6, %v612_v23, %v613_v36  ;;  %v2760_v2 = vadd.f32 %v2616_v12, %v551_v27  ;;  %v893_v36 = vld [vmem:[%s3252_s3 + $0xa8] sm:$0xff]  ;;  %v879_v41 = vld [vmem:[%s3252_s3 + $0x38] sm:$0xff]  ;;  %v880_v60 = vld [vmem:[%s3252_s3 + $0x40] sm:$0xff] }
 0x1ca   :  { %v581_v16 = vadd.f32 %v2616_v12, %v552_v46  ;;  %v668_v17 = vrot.slane %v595_v13, 4  ;;  %v642_v8 = vsel %vm611_vm6, %v640_v5, %v641_v32  ;;  %v582_v20 = vadd.f32 %v2616_v12, %v553_v4  ;;  %v881_v23 = vld [vmem:[%s3252_s3 + $0x48] sm:$0xff] }
 0x1cb   :  { %v573_v26 = vadd.f32 %v2616_v12, %v544_v10  ;;  %v605_v38 = vmax.f32 %v2760_v2, 0.0  ;;  %v696_v43 = vrot.slane %v600_v34, 4  ;;  %v1993_v47 = vpack.c.bf16 %v889_v48, %v888_v42  ;;  %v883_v42 = vld [vmem:[%s3252_s3 + $0x58] sm:$0xff]  ;;  %v900_v48 = vld [vmem:[%s3252_s3 + $0xe0] sm:$0xff] }
 0x1cc   :  { %689 = vrot.lane.b32.xlu1 %v600_v34, %s2162_s19  ;;  %705 = vrot.lane.b32.xlu0 %v699_v25, %s2166_s23  ;;  %v606_v18 = vmax.f32 %v581_v16, 0.0  ;;  %v670_v21 = vsel %vm611_vm6, %v668_v17, %v669_v31  ;;  %v607_v51 = vmax.f32 %v582_v20, 0.0  ;;  %v873_v25 = vld [vmem:[%s3252_s3 + $0x8] sm:$0xff]  ;;  %v1997_v32 = vpack.c.bf16 %v891_v29, %v890_v28  ;;  %v892_v34 = vld [vmem:[%s3252_s3 + $0xa0] sm:$0xff] }
 0x1cd   :  { %v598_v57 = vmax.f32 %v573_v26, 0.0  ;;  %v713_v58 = vrot.slane %v605_v38, 4  ;;  %v698_v12 = vsel %vm611_vm6, %v696_v43, %v697_v61  ;;  %v1995_v61 = vpack.c.bf16 %v873_v25, %v872_v24  ;;  %1994 = vmatprep.subr.bf16.mxu1 %v1993_v47  ;;  %v878_v31 = vld [vmem:[%s3252_s3 + $0x30] sm:$0xff]  ;;  %v901_v29 = vld [vmem:[%s3252_s3 + $0xe8] sm:$0xff] }
 0x1ce   :  { %v714_v13 = vrot.slane %v606_v18, 4  ;;  %v716_v19 = vrot.slane %v607_v51, 4  ;;  %v2001_v45 = vpack.c.bf16 %v893_v36, %v892_v34  ;;  %v2003_v56 = vpack.c.bf16 %v877_v55, %v876_v50  ;;  %v885_v50 = vld [vmem:[%s3252_s3 + $0x68] sm:$0xff]  ;;  %v902_v55 = vld [vmem:[%s3252_s3 + $0xf0] sm:$0xff] }
 0x1cf   :  { %1996 = vmatpush3.bf16.msra.mxu1 %v1995_v61  ;;  %v2007_v44 = vpack.c.bf16 %v879_v41, %v878_v31  ;;  %v2011_v27 = vpack.c.bf16 %v881_v23, %v880_v60  ;;  %v583_v25 = vmax.f32 %v2745_v11, 0.0  ;;  %v2017_v34 = vpack.c.bf16 %v901_v29, %v900_v48  ;;  %v903_v41 = vld [vmem:[%s3252_s3 + $0xf8] sm:$0xff] }
 0x1d0   :  { %647 = vrot.lane.b32.xlu1 %v644_v53, %s2164_s21  ;;  %619 = vrot.lane.b32.xlu0 %v616_v59, %s2163_s20  ;;  %v715_v22 = vsel %vm611_vm6, %v713_v58, %v714_v13  ;;  %v717_v52 = vsel %vm611_vm6, %v714_v13, %v716_v19  ;;  %v2005_v53 = vpack.c.bf16 %v895_v7, %v894_v35  ;;  %v897_v59 = vld [vmem:[%s3252_s3 + $0xc8] sm:$0xff]  ;;  %v584_v58 = vmax.f32 %v2740_v63, 0.0  ;;  %v898_v13 = vld [vmem:[%s3252_s3 + $0xd0] sm:$0xff] }
 0x1d1   :  { %1998 = vmatprep.subr.bf16.mxu1 %v1997_v32  ;;  %v2009_v40 = vpack.c.bf16 %v897_v59, %v896_v54  ;;  %v882_v63 = vld [vmem:[%s3252_s3 + $0x50] sm:$0xff]  ;;  %v887_v59 = vld [vmem:[%s3252_s3 + $0x78] sm:$0xff]  ;;  %v2021_v60 = vpack.c.bf16 %v903_v41, %v902_v55 }
 0x1d2   :  { %v2015_v28 = vpack.c.bf16 %v883_v42, %v882_v63  ;;  %v886_v54 = vld [vmem:[%s3252_s3 + $0x70] sm:$0xff] }
 0x1d3   :  { %v906_v41 = vld [vmem:[%s3252_s3 + $0x110] sm:$0xff] }
 0x1d4   :  { %675 = vrot.lane.b32.xlu1 %v672_v15, %s2165_s22  ;;  %617 = vrot.lane.b32.xlu0 %v614_v14, %s2163_s20 }
 0x1d8   :  { %703 = vrot.lane.b32.xlu1 %v700_v37, %s2166_s23  ;;  %645 = vrot.lane.b32.xlu0 %v642_v8, %s2164_s21  ;;  %v1999_v37 = vpack.c.bf16 %v875_v33, %v874_v49 }
 0x1da   :  { %2000 = vmatpush3.bf16.msra.mxu1 %v1999_v37 }
 0x1db   :  { %2002 = vmatprep.subr.bf16.mxu1 %v2001_v45  ;;  %v884_v45 = vld [vmem:[%s3252_s3 + $0x60] sm:$0xff] }
 0x1dc   :  { %685 = vrot.lane.b32.xlu1 %v598_v57, %s2162_s19  ;;  %673 = vrot.lane.b32.xlu0 %v670_v21, %s2165_s22  ;;  %v2019_v31 = vpack.c.bf16 %v885_v50, %v884_v45 }
 0x1de   :  { %2004 = vmatpush3.bf16.msra.mxu1 %v2003_v56 }
 0x1df   :  { %2006 = vmatprep.subr.bf16.mxu1 %v2005_v53 }
 0x1e0   :  { %718 = vrot.lane.b32.xlu1 %v715_v22, %s2163_s20  ;;  %701 = vrot.lane.b32.xlu0 %v698_v12, %s2166_s23  ;;  %v2013_v22 = vpack.c.bf16 %v899_v30, %v898_v13 }
 0x1e2   :  { %2008 = vmatpush3.bf16.msra.mxu1 %v2007_v44 }
 0x1e3   :  { %2010 = vmatprep.subr.bf16.mxu1 %v2009_v40 }
 0x1e4   :  { %722 = vrot.lane.b32.xlu1 %v716_v19, %s2163_s20  ;;  %720 = vrot.lane.b32.xlu0 %v717_v52, %s2163_s20 }
 0x1e6   :  { %2012 = vmatpush3.bf16.msra.mxu1 %v2011_v27 }
 0x1e7   :  { %2014 = vmatprep.subr.bf16.mxu1 %v2013_v22 }
 0x1ea   :  { %2016 = vmatpush3.bf16.msra.mxu1 %v2015_v28 }
 0x1eb   :  { %2018 = vmatprep.subr.bf16.mxu1 %v2017_v34 }
 0x1ee   :  { %2020 = vmatpush3.bf16.msra.mxu1 %v2019_v31 }
 0x1ef   :  { %2022 = vmatprep.subr.bf16.mxu1 %v2021_v60 }
 0x22a   :  { %v660_v46 = vpop.permute.xlu0 %659  ;;  %v632_v4 = vpop.permute.xlu1 %631 }
 0x22e   :  { %v688_v5 = vpop.permute.xlu0 %687  ;;  %v634_v10 = vpop.permute.xlu1 %633 }
 0x232   :  { %v630_v15 = vpop.permute.xlu1 %629  ;;  %v622_v14 = vpop.permute.xlu0 %621 }
 0x233   :  { %v729_v18 = vsel %vm335_vm5, %v585_v39, %v622_v14 }
 0x234   :  { %v733_v57 = vsel %vm730_vm7, %v729_v18, %v634_v10 }
 0x236   :  { %v662_v16 = vpop.permute.xlu1 %661  ;;  %v650_v17 = vpop.permute.xlu0 %649 }
 0x237   :  { %v737_v21 = vsel %vm734_vm8, %v733_v57, %v650_v17 }
 0x238   :  { %v741_v19 = vsel %vm738_vm9, %v737_v21, %v662_v16 }
 0x23a   :  { %v2845_v26 = vpop.permute.xlu1 %657  ;;  %v678_v8 = vpop.permute.xlu0 %677 }
 0x23b   :  { %v745_v24 = vsel %vm742_vm10, %v741_v19, %v678_v8 }
 0x23e   :  { %v690_v20 = vpop.permute.xlu1 %689  ;;  %v706_v43 = vpop.permute.xlu0 %705 }
 0x23f   :  { %v749_v61 = vsel %vm746_vm11, %v745_v24, %v690_v20 }
 0x240   :  { %v753_v11 = vsel %vm750_vm12, %v749_v61, %v706_v43  ;;  %v603_v43 = vmax.f32 %v2748_v9, 0.0 }
 0x241   :  { %v769_v23 = vrot.slane %v753_v11, 4 }
 0x242   :  { %v648_v39 = vpop.permute.xlu1 %647  ;;  %v620_v51 = vpop.permute.xlu0 %619 }
 0x243   :  { %v728_v12 = vsel %vm335_vm5, %v584_v58, %v620_v51  ;;  %v604_v58 = vmax.f32 %v2751_v3, 0.0 }
 0x244   :  { %v732_v52 = vsel %vm730_vm7, %v728_v12, %v632_v4  ;;  %v2023_v4 = vpack.c.bf16 %v887_v59, %v886_v54  ;;  %v907_v54 = vld [vmem:[%s3252_s3 + $0x118] sm:$0xff] }
 0x245   :  { %v736_v47 = vsel %vm734_vm8, %v732_v52, %v648_v39 }
 0x246   :  { %v676_v32 = vpop.permute.xlu1 %675  ;;  %v740_v49 = vsel %vm738_vm9, %v736_v47, %v660_v46  ;;  %v618_v33 = vpop.permute.xlu0 %617  ;;  %2024 = vmatpush3.bf16.msra.mxu1 %v2023_v4 }
 0x247   :  { %v744_v36 = vsel %vm742_vm10, %v740_v49, %v676_v32  ;;  %v727_v37 = vsel %vm335_vm5, %v583_v25, %v618_v33  ;;  %2025 = vmatprep.subr.bf16.mxu1 %v2156_v0 }
 0x248   :  { %v748_v7 = vsel %vm746_vm11, %v744_v36, %v688_v5  ;;  %v731_v53 = vsel %vm730_vm7, %v727_v37, %v630_v15  ;;  %v904_v36 = vld [vmem:[%s3252_s3 + $0x100] sm:$0xff]  ;;  %v905_v37 = vld [vmem:[%s3252_s3 + $0x108] sm:$0xff] }
 0x24a   :  { %v704_v35 = vpop.permute.xlu1 %703  ;;  %v646_v56 = vpop.permute.xlu0 %645 }
 0x24b   :  { %v752_v44 = vsel %vm750_vm12, %v748_v7, %v704_v35  ;;  %v735_v40 = vsel %vm734_vm8, %v731_v53, %v646_v56  ;;  %v2026_v7 = vpack.c.bf16 %v905_v37, %v904_v36  ;;  %v920_v37 = vld [vmem:[%s3252_s3 + $0x180] sm:$0xff] }
 0x24c   :  { %v758_v27 = vrot.slane %v752_v44, 2  ;;  %v768_v46 = vrot.slane %v752_v44, 4  ;;  %v739_v15 = vsel %vm738_vm9, %v735_v40, %v2845_v26 }
 0x24e   :  { %v686_v5 = vpop.permute.xlu1 %685  ;;  %v674_v10 = vpop.permute.xlu0 %673  ;;  %786 = vrot.lane.b32.xlu0 %v758_v27, %s2164_s21  ;;  %v770_v14 = vsel %vm611_vm6, %v768_v46, %v769_v23 }
 0x24f   :  { %v743_v16 = vsel %vm742_vm10, %v739_v15, %v674_v10  ;;  %v2108_v17 = vpack.i.bf16 %v758_v27, %v770_v14  ;;  %v909_v10 = vld [vmem:[%s3252_s3 + $0x128] sm:$0xff] }
 0x250   :  { %v747_v20 = vsel %vm746_vm11, %v743_v16, %v686_v5  ;;  %v908_v5 = vld [vmem:[%s3252_s3 + $0x120] sm:$0xff] }
 0x251   :  { %2109 = vrot.lane.b32.xlu1 %v2108_v17, %s2165_s22 }
 0x252   :  { %v719_v8 = vpop.permute.xlu1 %718  ;;  %v702_v18 = vpop.permute.xlu0 %701 }
 0x253   :  { %v751_v26 = vsel %vm750_vm12, %v747_v20, %v702_v18  ;;  %v754_v21 = vsel %vm335_vm5, %v603_v43, %v719_v8 }
 0x254   :  { %v763_v57 = vrot.slane %v751_v26, 2  ;;  %v816_v39 = vrot.slane %v754_v21, 2  ;;  %v834_v51 = vrot.slane %v754_v21, 4  ;;  %v2123_v3 = vpack.i.bf16 %v754_v21, %v751_v26 }
 0x255   :  { %783 = vrot.lane.b32.xlu1 %v751_v26, %s2162_s19  ;;  %v774_v42 = vrot.slane %v751_v26, 4 }
 0x256   :  { %v721_v13 = vpop.permute.xlu0 %720  ;;  %764 = vrot.lane.b32.xlu0 %v763_v57, %s2161_s2  ;;  %v2118_v52 = vpack.i.bf16 %v816_v39, %v763_v57  ;;  %v723_v63 = vpop.permute.xlu1 %722 }
 0x257   :  { %v755_v30 = vsel %vm335_vm5, %v604_v58, %v721_v13  ;;  %v756_v48 = vsel %vm335_vm5, %v605_v38, %v723_v63  ;;  %v2931_v47 = vsel %vm611_vm6, %v774_v42, %v768_v46  ;;  %v2029_v46 = vpack.c.bf16 %v907_v54, %v906_v41  ;;  %v910_v58 = vld [vmem:[%s3252_s3 + $0x130] sm:$0xff]  ;;  %v911_v13 = vld [vmem:[%s3252_s3 + $0x138] sm:$0xff]  ;;  %v913_v63 = vld [vmem:[%s3252_s3 + $0x148] sm:$0xff] }
 0x258   :  { %v808_v22 = vrot.slane %v755_v30, 2  ;;  %v824_v12 = vrot.slane %v755_v30, 4  ;;  %v825_v24 = vrot.slane %v756_v48, 4 }
 0x25a   :  { %v2920_v9 = vsel %vm611_vm6, %v834_v51, %v824_v12  ;;  %771 = vrot.lane.b32.xlu0 %v770_v14, %s2166_s23  ;;  %v2113_v19 = vpack.i.bf16 %v808_v22, %v758_v27  ;;  %v826_v25 = vsel %vm611_vm6, %v824_v12, %v825_v24  ;;  %v2035_v12 = vpack.c.bf16 %v911_v13, %v910_v58  ;;  %v914_v24 = vld [vmem:[%s3252_s3 + $0x150] sm:$0xff]  ;;  %v1200_v58 = vld [vmem:[%s3253_s4 + $0xc8] sm:$0xff] }
 0x25c   :  { %2114 = vrot.lane.b32.xlu1 %v2113_v19, %s2163_s20 }
 0x25e   :  { %2119 = vrot.lane.b32.xlu0 %v2118_v52, %s2162_s19  ;;  %v912_v52 = vld [vmem:[%s3252_s3 + $0x140] sm:$0xff] }
 0x25f   :  { %v2038_v42 = vpack.c.bf16 %v913_v63, %v912_v52  ;;  %v1201_v52 = vld [vmem:[%s3253_s4 + $0xd0] sm:$0xff]  ;;  %v1202_v63 = vld [vmem:[%s3253_s4 + $0xd8] sm:$0xff] }
 0x260   :  { %2124 = vrot.lane.b32.xlu1 %v2123_v3, %s2160_s18 }
 0x262   :  { %827 = vrot.lane.b32.xlu0 %v770_v14, %s2164_s21 }
 0x264   :  { %793 = vrot.lane.b32.xlu1 %v2931_v47, %s2161_s2 }
 0x266   :  { %776 = vrot.lane.b32.xlu0 %v2931_v47, %s2160_s18 }
 0x268   :  { %829 = vrot.lane.b32.xlu1 %v826_v25, %s2164_s21  ;;  %v915_v25 = vld [vmem:[%s3252_s3 + $0x158] sm:$0xff] }
 0x2c0   :  { %v787_v38 = vpop.permute.xlu0 %786 }
 0x2c1   :  { %v797_v61 = vsel %vm730_vm7, %v787_v38, %v763_v57 }
 0x2c3   :  { %v2939_v2 = vpop.permute.xlu1 %2109 }
 0x2c4   :  { %v2111_v28 = vunpack.i.l.bf16 %v2939_v2  ;;  %v2112_v34 = vunpack.i.h.bf16 %v2939_v2 }
 0x2c6   :  { %v798_v33 = vsel %vm750_vm12, %v797_v61, %v2111_v28  ;;  %v779_v31 = vsel %vm742_vm10, %v751_v26, %v2112_v34  ;;  %v2032_v26 = vpack.c.bf16 %v909_v10, %v908_v5  ;;  %v917_v61 = vld [vmem:[%s3252_s3 + $0x168] sm:$0xff]  ;;  %v1195_v5 = vld [vmem:[%s3253_s4 + $0xa0] sm:$0xff] }
 0x2c7   :  { %v784_v29 = vpop.permute.xlu1 %783  ;;  %v845_v55 = vrot.slane %v798_v33, 2  ;;  %v919_v33 = vld [vmem:[%s3252_s3 + $0x178] sm:$0xff]  ;;  %v1196_v10 = vld [vmem:[%s3253_s4 + $0xa8] sm:$0xff] }
 0x2c8   :  { %v796_v32 = vsel %vm742_vm10, %v784_v29, %v787_v38  ;;  %v765_v49 = vpop.permute.xlu0 %764  ;;  %v2041_v38 = vpack.c.bf16 %v915_v25, %v914_v24  ;;  %v916_v29 = vld [vmem:[%s3252_s3 + $0x160] sm:$0xff]  ;;  %v1186_v24 = vld [vmem:[%s3253_s4 + $0x58] sm:$0xff] }
 0x2c9   :  { %v844_v11 = vrot.slane %v796_v32, 2  ;;  %v780_v45 = vsel %vm730_vm7, %v2112_v34, %v765_v49  ;;  %v2044_v32 = vpack.c.bf16 %v917_v61, %v916_v29  ;;  %v918_v49 = vld [vmem:[%s3252_s3 + $0x170] sm:$0xff]  ;;  %v1203_v25 = vld [vmem:[%s3253_s4 + $0xe0] sm:$0xff] }
 0x2ca   :  { %v2047_v34 = vpack.c.bf16 %v919_v33, %v918_v49 }
 0x2cb   :  { %v864_v40 = vsel %vm863_vm13, %v779_v31, %v844_v11  ;;  %v858_v31 = vrot.slane %v2920_v9, 4  ;;  %v1192_v9 = vld [vmem:[%s3253_s4 + $0x88] sm:$0xff] }
 0x2cc   :  { %v2955_v50 = vpop.permute.xlu0 %771 }
 0x2cd   :  { %v781_v35 = vsel %vm750_vm12, %v780_v45, %v2955_v50 }
 0x2ce   :  { %v2115_v56 = vpop.permute.xlu1 %2114  ;;  %v865_v53 = vsel %vm863_vm13, %v781_v35, %v845_v55 }
 0x2cf   :  { %v2117_v59 = vunpack.i.h.bf16 %v2115_v56  ;;  %v2116_v44 = vunpack.i.l.bf16 %v2115_v56  ;;  %994 = vmatprep.mubr.f32.mxu1 %v865_v53 }
 0x2d0   :  { %v2120_v60 = vpop.permute.xlu0 %2119  ;;  %995 = vmatmul.mubr.f32.vlgmr.msra.gmra.mrb[0].mxu1 %v864_v40  ;;  %v1193_v40 = vld [vmem:[%s3253_s4 + $0x90] sm:$0xff] }
 0x2d1   :  { %v2122_v23 = vunpack.i.h.bf16 %v2120_v60  ;;  %v2121_v27 = vunpack.i.l.bf16 %v2120_v60  ;;  %2027 = vmatpush1.bf16.msra.mxu1 %v2026_v7  ;;  %v813_v16 = vsel %vm335_vm5, %v2116_v44, %v2117_v59  ;;  %v1194_v60 = vld [vmem:[%s3253_s4 + $0x98] sm:$0xff] }
 0x2d2   :  { %v2125_v4 = vpop.permute.xlu1 %2124  ;;  %2028 = vmatprep.subr.bf16.mxu1 %v2156_v0 }
 0x2d3   :  { %v2127_v15 = vunpack.i.h.bf16 %v2125_v4  ;;  %v2126_v14 = vunpack.i.l.bf16 %v2125_v4  ;;  %v821_v17 = vsel %vm746_vm11, %v2121_v27, %v2122_v23  ;;  %v2056_v27 = vpack.c.bf16 %v1194_v60, %v1193_v40  ;;  %v1178_v4 = vld [vmem:[%s3253_s4 + $0x18] sm:$0xff] }
 0x2d4   :  { %v828_v8 = vpop.permute.xlu0 %827  ;;  %v838_v18 = vsel %vm730_vm7, %v813_v16, %v821_v17  ;;  %v1179_v16 = vld [vmem:[%s3253_s4 + $0x20] sm:$0xff]  ;;  %v1180_v17 = vld [vmem:[%s3253_s4 + $0x28] sm:$0xff] }
 0x2d5   :  { %v805_v20 = vsel %vm738_vm9, %v2126_v14, %v2127_v15  ;;  %v839_v43 = vsel %vm750_vm12, %v838_v18, %v828_v8  ;;  %2030 = vmatpush1.bf16.msra.mxu1 %v2029_v46  ;;  %v1177_v46 = vld [vmem:[%s3253_s4 + $0x10] sm:$0xff]  ;;  %v2060_v14 = vpack.c.bf16 %v1196_v10, %v1195_v5  ;;  %v1198_v18 = vld [vmem:[%s3253_s4 + $0xb8] sm:$0xff] }
 0x2d6   :  { %v856_v57 = vrot.slane %v839_v43, 4  ;;  %2031 = vmatprep.subr.bf16.mxu1 %v2156_v0  ;;  %v837_v21 = vsel %vm742_vm10, %v805_v20, %v2116_v44  ;;  %v794_v30 = vpop.permute.xlu1 %793  ;;  %v1176_v44 = vld [vmem:[%s3253_s4 + $0x8] sm:$0xff]  ;;  %v2058_v15 = vpack.c.bf16 %v1178_v4, %v1177_v46  ;;  %v2062_v20 = vpack.c.bf16 %v1180_v17, %v1179_v16 }
 0x2d7   :  { %v855_v39 = vrot.slane %v837_v21, 4  ;;  %v847_v19 = vrot.slane %v794_v30, 2  ;;  %v799_v45 = vsel %vm738_vm9, %v2111_v28, %v794_v30  ;;  %v1199_v21 = vld [vmem:[%s3253_s4 + $0xc0] sm:$0xff] }
 0x2d8   :  { %v869_v51 = vsel %vm611_vm6, %v845_v55, %v856_v57  ;;  %v777_v3 = vpop.permute.xlu0 %776  ;;  %v846_v7 = vrot.slane %v799_v45, 2 }
 0x2d9   :  { %2033 = vmatpush1.bf16.msra.mxu1 %v2032_v26  ;;  %999 = vmatprep.mubr.f32.mxu1 %v869_v51  ;;  %v868_v22 = vsel %vm611_vm6, %v844_v11, %v855_v39  ;;  %v867_v48 = vsel %vm863_vm13, %v777_v3, %v847_v19  ;;  %v921_v11 = vld [vmem:[%s3252_s3 + $0x188] sm:$0xff]  ;;  %v782_v56 = vsel %vm738_vm9, %v2955_v50, %v777_v3  ;;  %v1175_v50 = vld [vmem:[%s3253_s4] sm:$0xff]  ;;  %v1181_v26 = vld [vmem:[%s3253_s4 + $0x30] sm:$0xff] }
 0x2da   :  { %1000 = vmatmul.mubr.f32.gmra.mrb[2].mxu1 %v868_v22  ;;  %2034 = vmatprep.subr.bf16.mxu1 %v2156_v0  ;;  %v830_v36 = vpop.permute.xlu1 %829  ;;  %v2050_v35 = vpack.c.bf16 %v921_v11, %v920_v37  ;;  %v866_v2 = vsel %vm863_vm13, %v782_v56, %v846_v7  ;;  %v871_v28 = vsel %vm611_vm6, %v847_v19, %v858_v31  ;;  %v1184_v19 = vld [vmem:[%s3253_s4 + $0x48] sm:$0xff] }
 0x2db   :  { %1004 = vmatprep.mubr.f32.mxu1 %v856_v57  ;;  %v831_v55 = vsel %vm734_vm8, %v828_v8, %v830_v36  ;;  %v2054_v23 = vpack.c.bf16 %v1176_v44, %v1175_v50  ;;  %v1197_v8 = vld [vmem:[%s3253_s4 + $0xb0] sm:$0xff]  ;;  %v1182_v57 = vld [vmem:[%s3253_s4 + $0x38] sm:$0xff]  ;;  %v2068_v22 = vpack.c.bf16 %v1200_v58, %v1199_v21 }
 0x2dc   :  { %v840_v53 = vsel %vm738_vm9, %v831_v55, %v2931_v47  ;;  %v1191_v47 = vld [vmem:[%s3253_s4 + $0x80] sm:$0xff]  ;;  %v2064_v43 = vpack.c.bf16 %v1198_v18, %v1197_v8 }
 0x2dd   :  { %2036 = vmatpush1.bf16.msra.mxu1 %v2035_v12  ;;  %v857_v41 = vrot.slane %v840_v53, 4  ;;  %v2052_v59 = vpack.c.bf16 %v1192_v9, %v1191_v47  ;;  %v1183_v12 = vld [vmem:[%s3253_s4 + $0x40] sm:$0xff] }
 0x2de   :  { %1005 = vmatmul.mubr.f32.gmra.mrb[4].mxu1 %v855_v39  ;;  %2037 = vmatprep.subr.bf16.mxu1 %v2156_v0  ;;  %v2066_v39 = vpack.c.bf16 %v1182_v57, %v1181_v26  ;;  %v2070_v3 = vpack.c.bf16 %v1184_v19, %v1183_v12  ;;  %v3131_v12 = vld [vmem:[%s3251_s5 + $0x30] sm:$0xff] }
 0x2df   :  { %1715 = vmatprep.mubr.msk.f32.mxu1 %vm335_vm5, %v867_v48  ;;  %v870_v54 = vsel %vm611_vm6, %v846_v7, %v857_v41  ;;  %v1185_v48 = vld [vmem:[%s3253_s4 + $0x50] sm:$0xff]  ;;  %vm1680_vm6 = vcmask 556032  }
 0x2e0   :  { %v2074_v29 = vpack.c.bf16 %v1186_v24, %v1185_v48  ;;  %v1187_v24 = vld [vmem:[%s3253_s4 + $0x60] sm:$0xff] }
 0x2e1   :  { %2039 = vmatpush1.bf16.msra.mxu1 %v2038_v42  ;;  %v2072_v42 = vpack.c.bf16 %v1202_v63, %v1201_v52 }
 0x2e2   :  { %2040 = vmatprep.subr.bf16.mxu1 %v2156_v0 }
 0x2e5   :  { %2042 = vmatpush1.bf16.msra.mxu1 %v2041_v38  ;;  %v1204_v38 = vld [vmem:[%s3253_s4 + $0xe8] sm:$0xff] }
 0x2e6   :  { %2043 = vmatprep.subr.bf16.mxu1 %v2156_v0 }
 0x2e9   :  { %2045 = vmatpush1.bf16.msra.mxu1 %v2044_v32  ;;  %v2076_v32 = vpack.c.bf16 %v1204_v38, %v1203_v25  ;;  %v1188_v25 = vld [vmem:[%s3253_s4 + $0x68] sm:$0xff]  ;;  %v1205_v38 = vld [vmem:[%s3253_s4 + $0xf0] sm:$0xff] }
 0x2ea   :  { %2046 = vmatprep.subr.bf16.mxu1 %v2156_v0 }
 0x2ed   :  { %2048 = vmatpush1.bf16.msra.mxu1 %v2047_v34 }
 0x2ee   :  { %2049 = vmatprep.subr.bf16.mxu1 %v2156_v0 }
 0x2f1   :  { %2051 = vmatpush1.bf16.msra.mxu1 %v2050_v35 }
 0x2f2   :  { %2053 = vmatprep.subr.bf16.mxu1 %v2052_v59 }
 0x2f4   :  { %1075 = vmatmul.mubr.f32.vlgmr.msra.gmra.mrb[6].mxu1 %v866_v2 }
 0x2f5   :  { %1716 = vmatprep.mubr.msk.f32.mxu1 %vm335_vm5, %v871_v28  ;;  %2055 = vmatpush3.bf16.msra.mxu1 %v2054_v23 }
 0x2f6   :  { %2057 = vmatprep.subr.bf16.mxu1 %v2056_v27 }
 0x2f8   :  { %1080 = vmatmul.mubr.f32.gmra.mrb[8].mxu1 %v870_v54 }
 0x2f9   :  { %1717 = vmatprep.mubr.msk.f32.mxu1 %vm335_vm5, %v858_v31  ;;  %2059 = vmatpush3.bf16.msra.mxu1 %v2058_v15  ;;  %vm1678_vm5 = vcmask 547840  }
 0x2fa   :  { %2061 = vmatprep.subr.bf16.mxu1 %v2060_v14 }
 0x2fc   :  { %1085 = vmatmul.mubr.f32.gmra.mrb[10].mxu1 %v857_v41 }
 0x2fd   :  { %2063 = vmatpush3.bf16.msra.mxu1 %v2062_v20 }
 0x2fe   :  { %2065 = vmatprep.subr.bf16.mxu1 %v2064_v43 }
 0x301   :  { %2067 = vmatpush3.bf16.msra.mxu1 %v2066_v39 }
 0x302   :  { %2069 = vmatprep.subr.bf16.mxu1 %v2068_v22  ;;  %v1135_v22 = vsub.s32 3, %v2603_v1 }
 0x304   :  { %v1136_v48 = vrot.slane %v3131_v12, %v1135_v22  ;;  %v26_v22 = vld [vmem:[%s3251_s5 + $0x18] sm:$0xff] }
 0x305   :  { %2071 = vmatpush3.bf16.msra.mxu1 %v2070_v3 }
 0x306   :  { %2073 = vmatprep.subr.bf16.mxu1 %v2072_v42 }
 0x309   :  { %2075 = vmatpush3.bf16.msra.mxu1 %v2074_v29 }
 0x30a   :  { %2077 = vmatprep.subr.bf16.mxu1 %v2076_v32 }
 0x3a3   :  { %v1792_v13 = vpop.f32.mrb[0].mxu1 }
 0x3a4   :  { %v1793_v30 = vpop.f32.mrb[1].mxu1 }
 0x3a5   :  { %v1794_v51 = vadd.f32 %v1793_v30, %v1792_v13 }
 0x3ad   :  { %v1795_v61 = vpop.f32.mrb[2].mxu1 }
 0x3ae   :  { %v1796_v49 = vpop.f32.mrb[3].mxu1 }
 0x3af   :  { %v1797_v33 = vadd.f32 %v1796_v49, %v1795_v61  ;;  %v2078_v49 = vpack.c.bf16 %v1188_v25, %v1187_v24 }
 0x3b1   :  { %v1798_v34 = vpop.f32.mrb[4].mxu1  ;;  %2079 = vmatpush3.bf16.msra.mxu1 %v2078_v49 }
 0x3b2   :  { %v1799_v36 = vpop.f32.mrb[5].mxu1 }
 0x3b3   :  { %v1800_v37 = vadd.f32 %v1799_v36, %v1798_v34  ;;  %v1189_v36 = vld [vmem:[%s3253_s4 + $0x70] sm:$0xff] }
 0x3c7   :  { %v1076_v11 = vpop.f32.mrb[6].mxu1 }
 0x3c8   :  { %v1077_v45 = vadd.f32 %v1794_v51, %v1076_v11  ;;  %v1078_v55 = vpop.f32.mrb[7].mxu1  ;;  %v1128_v51 = vsub.s32 2, %v2603_v1 }
 0x3ca   :  { %v1090_v53 = vsel %vm730_vm7, %v1077_v45, 0.0  ;;  %v1129_v19 = vrot.slane %v3131_v12, %v1128_v51 }
 0x3cb   :  { %v1081_v35 = vpop.f32.mrb[8].mxu1 }
 0x3cc   :  { %v1082_v7 = vadd.f32 %v1797_v33, %v1081_v35  ;;  %v1083_v56 = vpop.f32.mrb[9].mxu1  ;;  %v1206_v33 = vld [vmem:[%s3253_s4 + $0xf8] sm:$0xff] }
 0x3cd   :  { %v2080_v34 = vpack.c.bf16 %v1206_v33, %v1205_v38  ;;  %v27_v33 = vld [vmem:[%s3251_s5 + $0x20] sm:$0xff] }
 0x3ce   :  { %v1091_v31 = vsel %vm730_vm7, %v1082_v7, 0.0  ;;  %1968 = vmatpush3.msk.msra.mxu0 %vm141_vm1, %v27_v33 }
 0x3cf   :  { %v1092_v2 = vadd.f32 %v1091_v31, %v1090_v53  ;;  %v1086_v41 = vpop.f32.mrb[10].mxu1  ;;  %2081 = vmatprep.subr.bf16.mxu1 %v2080_v34  ;;  %v1365_v34 = vsub.s32 7, %v2603_v1 }
 0x3d0   :  { %v1087_v28 = vadd.f32 %v1800_v37, %v1086_v41  ;;  %v1088_v54 = vpop.f32.mrb[11].mxu1  ;;  %v1190_v37 = vld [vmem:[%s3253_s4 + $0x78] sm:$0xff] }
 0x3d1   :  { %v2082_v35 = vpack.c.bf16 %v1190_v37, %v1189_v36  ;;  %v1366_v36 = vrot.slane %v3131_v12, %v1365_v34 }
 0x3d2   :  { %v1094_v47 = vsel %vm1093_vm14, %v1087_v28, 0.0 }
 0x3d3   :  { %v1095_v9 = vadd.f32 %v1094_v47, %v1092_v2  ;;  %2083 = vmatpush3.bf16.msra.mxu1 %v2082_v35 }
 0x3d4   :  { %2084 = vmatprep.subr.bf16.mxu1 %v2156_v0 }
 0x3d5   :  { %v1096_v50 = vrot.slane %v1095_v9, 4 }
 0x3d7   :  { %v1097_v59 = vadd.f32 %v1096_v50, %v1095_v9 }
 0x3d9   :  { %v1098_v44 = vrot.slane %v1097_v59, 2 }
 0x3db   :  { %v1099_v40 = vadd.f32 %v1098_v44, %v1097_v59 }
 0x3dd   :  { %v1100_v60 = vrot.slane %v1099_v40, 1 }
 0x3df   :  { %v1101_v23 = vadd.f32 %v1100_v60, %v1099_v40 }
 0x3e1   :  { %v1102_v27 = vmul.f32 0.055555556, %v1101_v23 }
 0x3e3   :  { %v1103_v46 = vsub.f32 %v1077_v45, %v1102_v27  ;;  %v1104_v4 = vsub.f32 %v1082_v7, %v1102_v27  ;;  %v1105_v5 = vsub.f32 %v1087_v28, %v1102_v27 }
 0x3e5   :  { %v1106_v10 = vmul.f32 %v1103_v46, %v1103_v46  ;;  %v1107_v15 = vmul.f32 %v1104_v4, %v1104_v4  ;;  %v1108_v14 = vmul.f32 %v1105_v5, %v1105_v5 }
 0x3e7   :  { %v1109_v16 = vsel %vm730_vm7, %v1106_v10, 0.0  ;;  %v1110_v17 = vsel %vm730_vm7, %v1107_v15, 0.0  ;;  %v1112_v18 = vsel %vm1093_vm14, %v1108_v14, 0.0  ;;  %v1208_v10 = vld [vmem:[%s3253_s4 + $0x108] sm:$0xff] }
 0x3e8   :  { %v1111_v8 = vadd.f32 %v1110_v17, %v1109_v16 }
 0x3ea   :  { %v1113_v20 = vadd.f32 %v1112_v18, %v1111_v8 }
 0x3ec   :  { %v1114_v43 = vrot.slane %v1113_v20, 4 }
 0x3ee   :  { %v1115_v26 = vadd.f32 %v1114_v43, %v1113_v20 }
 0x3f0   :  { %v1116_v57 = vrot.slane %v1115_v26, 2 }
 0x3f2   :  { %v1117_v21 = vadd.f32 %v1116_v57, %v1115_v26  ;;  %v1209_v26 = vld [vmem:[%s3253_s4 + $0x110] sm:$0xff]  ;;  %v1210_v57 = vld [vmem:[%s3253_s4 + $0x118] sm:$0xff] }
 0x3f4   :  { %v1118_v58 = vrot.slane %v1117_v21, 1 }
 0x3f6   :  { %v1119_v13 = vadd.f32 %v1118_v58, %v1117_v21  ;;  %v2088_v21 = vpack.c.bf16 %v1210_v57, %v1209_v26 }
 0x3f8   :  { %v1120_v30 = vmul.f32 0.055555556, %v1119_v13  ;;  %v23_v13 = vld [vmem:[%s3251_s5] sm:$0xff] }
 0x3fa   :  { %v1121_v39 = vadd.f32 1e-05, %v1120_v30  ;;  %v24_v30 = vld [vmem:[%s3251_s5 + $0x8] sm:$0xff] }
 0x3fb   :  { %v2091_v51 = vpack.c.bf16 %v24_v30, %v23_v13 }
 0x3fc   :  { %2145 = vrsqrt.f32 %v1121_v39  ;;  %v25_v39 = vld [vmem:[%s3251_s5 + $0x10] sm:$0xff] }
 0x406   :  { %v2146_v52 = vpop.eup %2145 }
 0x407   :  { %v1123_v63 = vmul.f32 %v2146_v52, %v1103_v46  ;;  %v1124_v3 = vmul.f32 %v2146_v52, %v1104_v4  ;;  %v1125_v42 = vmul.f32 %v2146_v52, %v1105_v5  ;;  %v1207_v5 = vld [vmem:[%s3253_s4 + $0x100] sm:$0xff] }
 0x408   :  { %v2085_v18 = vpack.c.bf16 %v1208_v10, %v1207_v5  ;;  %v28_v10 = vld [vmem:[%s3251_s5 + $0x28] sm:$0xff]  ;;  %s2167_s5 = smov 99  }
 0x409   :  { %v1130_v29 = vmul.f32 %v1129_v19, %v1123_v63  ;;  %v1131_v61 = vmul.f32 %v1129_v19, %v1124_v3  ;;  %v1132_v32 = vmul.f32 %v1129_v19, %v1125_v42  ;;  %v2094_v19 = vpack.c.bf16 %v26_v22, %v25_v39 }
 0x40a   :  { %v1356_v42 = vsub.s32 4, %v2603_v1 }
 0x40b   :  { %v1139_v11 = vadd.f32 %v1136_v48, %v1132_v32  ;;  %v1137_v45 = vadd.f32 %v1136_v48, %v1130_v29  ;;  %v1138_v55 = vadd.f32 %v1136_v48, %v1131_v61 }
 0x40c   :  { %v1357_v48 = vrot.slane %v3131_v12, %v1356_v42 }
 0x40d   :  { %v1140_v7 = vmax.f32 %v1137_v45, 0.0  ;;  %v1141_v56 = vmax.f32 %v1138_v55, 0.0  ;;  %v1142_v58 = vmax.f32 %v1139_v11, 0.0 }
 0x40f   :  { %v1148_v53 = vrot.slane %v1140_v7, 4  ;;  %v1161_v31 = vrot.slane %v1141_v56, 4  ;;  %v1144_v2 = vrot.slane %v1140_v7, 2  ;;  %v1157_v41 = vrot.slane %v1141_v56, 2 }
 0x410   :  { %v1152_v47 = vrot.slane %v1140_v7, 6  ;;  %v1165_v9 = vrot.slane %v1141_v56, 6 }
 0x411   :  { %v2133_v28 = vpack.i.bf16 %v1148_v53, %v1161_v31  ;;  %v2128_v54 = vpack.i.bf16 %v1144_v2, %v1157_v41  ;;  %v1473_v41 = vsub.s32 5, %v2603_v1 }
 0x412   :  { %v2138_v50 = vpack.i.bf16 %v1152_v47, %v1165_v9 }
 0x413   :  { %2134 = vrot.lane.b32.xlu1 %v2133_v28, %s2160_s18  ;;  %2129 = vrot.lane.b32.xlu0 %v2128_v54, %s2161_s2  ;;  %v1474_v28 = vrot.slane %v3131_v12, %v1473_v41  ;;  %v1449_v54 = vand.u32 127, %v525_v62 }
 0x417   :  { %2139 = vrot.lane.b32.xlu0 %v2138_v50, %s2162_s19 }
 0x485   :  { %v2135_v59 = vpop.permute.xlu1 %2134  ;;  %v2130_v44 = vpop.permute.xlu0 %2129 }
 0x486   :  { %v2132_v40 = vunpack.i.h.bf16 %v2130_v44  ;;  %v2131_v60 = vunpack.i.l.bf16 %v2130_v44  ;;  %v2137_v23 = vunpack.i.h.bf16 %v2135_v59  ;;  %v2136_v27 = vunpack.i.l.bf16 %v2135_v59 }
 0x488   :  { %v1169_v46 = vsel %vm730_vm7, %v1140_v7, %v2132_v40  ;;  %v1172_v4 = vsel %vm730_vm7, %v1141_v56, %v2131_v60  ;;  %v1470_v56 = vld [vmem:[%s3254_s1] sm:$0x3] }
 0x489   :  { %v2140_v15 = vpop.permute.xlu0 %2139  ;;  %v1173_v17 = vsel %vm738_vm9, %v1172_v4, %v2136_v27  ;;  %v1170_v8 = vsel %vm738_vm9, %v1169_v46, %v2137_v23  ;;  %v1565_v4 = vsub.s32 6, %v2603_v1 }
 0x48a   :  { %v2142_v14 = vunpack.i.h.bf16 %v2140_v15  ;;  %v2141_v16 = vunpack.i.l.bf16 %v2140_v15 }
 0x48b   :  { %v1566_v5 = vrot.slane %v3131_v12, %v1565_v4 }
 0x48c   :  { %v1174_v20 = vsel %vm746_vm11, %v1173_v17, %v2141_v16  ;;  %v1171_v43 = vsel %vm746_vm11, %v1170_v8, %v2142_v14 }
 0x48d   :  { %1278 = vmatprep.mubr.f32.mxu1 %v1174_v20 }
 0x48e   :  { %1279 = vmatmul.mubr.f32.vlgmr.msra.gmra.mrb[12].mxu1 %v1171_v43 }
 0x48f   :  { %2086 = vmatpush3.bf16.msra.mxu1 %v2085_v18  ;;  %1953 = vmatprep.mubr.msk.f32.mxu1 %vm2157_vm0, %v2158_v6 }
 0x490   :  { %2087 = vmatprep.subr.bf16.mxu1 %v2156_v0 }
 0x493   :  { %2089 = vmatpush3.bf16.msra.mxu1 %v2088_v21 }
 0x494   :  { %2090 = vmatprep.subr.bf16.mxu1 %v2156_v0 }
 0x496   :  { %1954 = vmatmul.mubr.msk.f32.vlgmr.msra.gmra.mrb[14].mxu1 %vm730_vm7, %v1142_v58 }
 0x497   :  { %1964 = vmatprep.mubr.msk.f32.mxu1 %vm2157_vm0, %v2158_v6  ;;  %2092 = vmatpush3.bf16.msra.mxu1 %v2091_v51 }
 0x498   :  { %2093 = vmatprep.subr.bf16.mxu1 %v2156_v0 }
 0x49b   :  { %2095 = vmatpush3.bf16.msra.mxu1 %v2094_v19 }
 0x49c   :  { %1972 = vmatprep.subr.mxu1 %v2158_v6 }
 0x561   :  { %v1833_v52 = vpop.f32.mrb[12].mxu1 }
 0x562   :  { %v1834_v63 = vpop.f32.mrb[13].mxu1 }
 0x563   :  { %v1835_v3 = vadd.f32 %v1834_v63, %v1833_v52 }
 0x569   :  { %v1350_v24 = vpop.f32.mrb[14].mxu1 }
 0x56a   :  { %v3198_v25 = vadd.f32 %v1835_v3, %v1350_v24  ;;  %v1955_v38 = vpop.f32.mrb[15].mxu1 }
 0x56c   :  { %v1358_v29 = vadd.f32 %v1357_v48, %v3198_v25 }
 0x56e   :  { %v1359_v61 = vmul.f32 0.5, %v1358_v29 }
 0x570   :  { %2147 = vtanh.f32 %v1359_v61 }
 0x57a   :  { %v2148_v32 = vpop.eup %2147 }
 0x57b   :  { %v1361_v0 = vadd.f32 1.0, %v2148_v32 }
 0x57d   :  { %v1362_v49 = vmul.f32 0.5, %v1361_v0 }
 0x57f   :  { %1965 = vmatmul.mubr.msk.f32.vlgmr.msra.gmra.mrb[16].mxu1 %vm730_vm7, %v1362_v49  ;;  %vm1682_vm7 = vcmask 564224  }
 0x580   :  { %1974 = vmatprep.mubr.msk.f32.mxu1 %vm2157_vm0, %v2158_v6  ;;  %vm1481_vm0 = vcmask 23552   ;;  %1973 = vmatpush3.msk.msra.mxu1 %vm141_vm1, %v28_v10  ;;  %vm1676_vm1 = vcmask 285696  }
 0x652   :  { %v1436_v37 = vpop.f32.mrb[16].mxu1 }
 0x653   :  { %v1437_v11 = vadd.f32 %v1436_v37, %v1366_v36  ;;  %v1966_v45 = vpop.f32.mrb[17].mxu1 }
 0x655   :  { %v1440_v55 = vmul.f32 0.5, %v1437_v11 }
 0x657   :  { %2149 = vtanh.f32 %v1440_v55 }
 0x661   :  { %v2150_v35 = vpop.eup %2149 }
 0x662   :  { %v1442_v7 = vadd.f32 1.0, %v2150_v35 }
 0x664   :  { %v3213_v53 = vmul.f32 0.5, %v1442_v7 }
 0x666   :  { %v1480_v31 = vmul.f32 %v1470_v56, %v3213_v53  ;;  %v1445_v2 = vsel %vm1444_vm15, %v3213_v53, -inf }
 0x667   :  { %1446 = vmax.xlane.f32.xlu1 %v1445_v2 }
 0x668   :  { %1970 = vmatmul.mubr.msk.f32.vlgmr.msra.gmra.mrb[50].mxu0 %vm1481_vm0, %v1480_v31  ;;  %v1664_v15 = vsel %vm1444_vm15, %v1480_v31, 0.0 }
 0x678   :  { %1476 = vrot.lane.b32.xlu1 %v1474_v28, %s2161_s2 }
 0x6f4   :  { %v3223_v47 = vpop.xlane.xlu1 %1446 }
 0x6f5   :  { %vm1450_vm2 = vcmp.eq.f32.partialorder %v3213_v53, %v3223_v47 }
 0x6f6   :  { %v1451_v9 = vsel %vm1450_vm2, %v1449_v54, 3 }
 0x6f7   :  { %v1452_v50 = vsel %vm1444_vm15, %v1451_v9, 2147483647 }
 0x6f8   :  { %v1454_v59 = vshra.s32 %v1452_v50, 16  ;;  %v1453_v23 = vand.u32 65535, %v1452_v50  ;;  %v1477_v20 = vpop.permute.xlu1 %1476 }
 0x6f9   :  { %v1479_v26 = vadd.f32 %v1477_v20, %v3198_v25 }
 0x6fa   :  { %v1456_v44 = vcvt.s32.f32 %v1454_v59  ;;  %v1455_v46 = vcvt.s32.f32 %v1453_v23 }
 0x6fc   :  { %1457 = vmin.xlane.f32.xlu0 %v1456_v44 }
 0x73b   :  { %v1554_v40 = vpop.f32.mrb[50].mxu0 }
 0x73c   :  { %1559 = vrot.lane.b32.xlu1 %v1554_v40, %s2161_s2  ;;  %v1971_v60 = vpop.f32.mrb[51].mxu0 }
 0x789   :  { %v1458_v27 = vpop.xlane.xlu0 %1457 }
 0x78a   :  { %vm1459_vm3 = vcmp.eq.f32.partialorder %v1456_v44, %v1458_v27  ;;  %v1464_v14 = vcvt.f32.s32 %v1458_v27 }
 0x78b   :  { %v1460_v62 = vsel %vm1459_vm3, %v1455_v46, inf }
 0x78c   :  { %1461 = vmin.xlane.f32.xlu0 %v1460_v62  ;;  %v1465_v17 = vshll.u32 %v1464_v14, 16 }
 0x7a2   :  { %1568 = vrot.lane.b32.xlu0 %v1566_v5, %s2160_s18 }
 0x7ae   :  { %v1560_v43 = vpop.permute.xlu1 %1559 }
 0x7af   :  { %v1562_v57 = vadd.f32 %v1560_v43, %v1479_v26 }
 0x7b1   :  { %v1654_v21 = vmul.f32 0.5, %v1562_v57 }
 0x7b3   :  { %2151 = vtanh.f32 %v1654_v21 }
 0x7bd   :  { %v2152_v58 = vpop.eup %2151 }
 0x7be   :  { %v1656_v13 = vadd.f32 1.0, %v2152_v58 }
 0x7c0   :  { %v1657_v30 = vmul.f32 0.5, %v1656_v13 }
 0x7c1   :  { %1665 = vadd.xlane.f32.xlu0 %v1664_v15 }
 0x7c2   :  { %v1658_v22 = vmul.f32 %v1657_v30, %v1562_v57 }
 0x819   :  { %v1462_v16 = vpop.xlane.xlu0 %1461 }
 0x81a   :  { %v1463_v8 = vcvt.f32.s32 %v1462_v16 }
 0x81c   :  { %v1466_v18 = vadd.s32 %v1465_v17, %v1463_v8 }
 0x81e   :  { %vm1467_vm4 = vcmp.eq.s32.totalorder %v1449_v54, %v1466_v18 }
 0x81f   :  { %v1720_v1 = vsel %vm1467_vm4, 1.0, %v2158_v6  ;;  %v1569_v6 = vpop.permute.xlu0 %1568 }
 0x820   :  { %v1572_v12 = vmul.f32 %v1720_v1, %v3213_v53  ;;  %v1571_v19 = vadd.f32 %v1569_v6, %v3198_v25 }
 0x822   :  { %1975 = vmatmul.mubr.msk.f32.vlgmr.msra.gmra.mrb[18].mxu1 %vm1481_vm0, %v1572_v12 }
 0x84e   :  { %v1666_v0 = vpop.xlane.xlu0 %1665 }
 0x8f5   :  { %v1645_v39 = vpop.f32.mrb[18].mxu1 }
 0x8f6   :  { %v1976_v51 = vpop.f32.mrb[19].mxu1  ;;  %1650 = vrot.lane.b32.xlu1 %v1645_v39, %s2160_s18 }
 0x8fa   :  { %1668 = vrot.lane.b32.xlu1 %v1658_v22, %s2167_s5 }
 0x968   :  { %v1651_v52 = vpop.permute.xlu1 %1650 }
 0x969   :  { %v1653_v63 = vadd.f32 %v1651_v52, %v1571_v19 }
 0x96b   :  { %v1659_v3 = vmul.f32 0.5, %v1653_v63 }
 0x96c   :  { %v1669_v29 = vpop.permute.xlu1 %1668 }
 0x96d   :  { %2153 = vtanh.f32 %v1659_v3  ;;  %v1675_v61 = vsel %vm1481_vm0, %v3213_v53, %v1669_v29 }
 0x977   :  { %v2154_v42 = vpop.eup %2153 }
 0x978   :  { %v1661_v48 = vadd.f32 1.0, %v2154_v42 }
 0x97a   :  { %v1662_v24 = vmul.f32 0.5, %v1661_v48 }
 0x97c   :  { %v1663_v38 = vmul.f32 %v1662_v24, %v1653_v63 }
 0x97e   :  { %1672 = vrot.lane.b32.xlu1 %v1663_v38, %s2167_s5 }
 0x9f0   :  { %v1673_v32 = vpop.permute.xlu1 %1672 }
 0x9f1   :  { %v1677_v25 = vsel %vm1676_vm1, %v1675_v61, %v1673_v32 }
 0x9f2   :  { %v1679_v49 = vsel %vm1678_vm5, %v1677_v25, %v1666_v0 }
 0x9f3   :  { %v1681_v33 = vsel %vm1680_vm6, %v1679_v49, %v3223_v47 }
 0x9f4   :  { %v1683_v34 = vsel %vm1682_vm7, %v1681_v33, 0.0 }
 0x9f5   :  { %1684 = vst [vmem:[%s3255_s6] sm:$0x3] %v1683_v34 }

</bundles_post_ra>
